<compile_context>
chip_gen: v7x
topology: tpu7x:2x2x1
jax: 0.10.0
libtpu: 0.0.40
codegen_flags: <defaults>
</compile_context>

<pallas_src>
import functools

import numpy as np
import jax
import jax.numpy as jnp
from jax import lax
from jax.experimental import pallas as pl
from jax.experimental.pallas import tpu as pltpu

EPS = 1e-5            # nn.InstanceNorm1d default eps
LRELU_SLOPE = 0.2     # nn.LeakyReLU(0.2) for acti='lrelu'
MXU_PASSES = 3        # 3 = bf16_3x (near-f32 accuracy), 1 = single-pass bf16


# ----------------------------------------------------------------------------
# f32 matmul as explicit bf16 MXU passes with f32 accumulation.
# ----------------------------------------------------------------------------
def _dot_f32(a, b, dn):
    if MXU_PASSES == 1:
        return lax.dot_general(a.astype(jnp.bfloat16), b.astype(jnp.bfloat16),
                               dimension_numbers=dn,
                               preferred_element_type=jnp.float32)
    a_hi = a.astype(jnp.bfloat16)
    b_hi = b.astype(jnp.bfloat16)
    a_lo = (a - a_hi.astype(jnp.float32)).astype(jnp.bfloat16)
    b_lo = (b - b_hi.astype(jnp.float32)).astype(jnp.bfloat16)

    def dg(u, v):
        return lax.dot_general(u, v, dimension_numbers=dn,
                               preferred_element_type=jnp.float32)

    return dg(a_hi, b_hi) + dg(a_lo, b_hi) + dg(a_hi, b_lo)


# ----------------------------------------------------------------------------
# Fused kernel: all 6 conv layers + InstanceNorm + LeakyReLU + residuals for
# one sample.  Activations never leave VMEM/vregs between layers.
# ----------------------------------------------------------------------------
def _fused_encoder_kernel(*refs, plan, pad):
    x_ref = refs[0]
    out_ref = refs[-2]
    pad_ref = refs[-1]          # VMEM scratch for the reflection-padded input
    prm = refs[1:-2]

    h = x_ref[0]                # (T0, C0) when down layers exist, else (C0, T0)
    res = None

    for lay in plan:            # static Python unroll over the conv layers
        w = prm[lay["w"]][...]
        b = prm[lay["b"]][...]
        K = lay["k"]

        if lay["res_save"]:
            res = h

        if lay["kind"] == "down":
            # (T, C) layout: time on sublanes -> stride-s tap gather is a
            # native sublane-strided load from the reflection-padded scratch.
            T_in, C_in = lay["t_in"], lay["cin"]
            T_out, C_out, s = lay["t_out"], lay["cout"], lay["stride"]
            pad_ref[pad:pad + T_in, 0:C_in] = h
            for p in range(pad):                      # ReflectionPad1d borders
                pad_ref[p:p + 1, 0:C_in] = h[pad - p:pad - p + 1, :]
                pad_ref[pad + T_in + p:pad + T_in + p + 1, 0:C_in] = (
                    h[T_in - 2 - p:T_in - 1 - p, :])
            taps = [pad_ref[pl.ds(k, T_out, s), pl.ds(0, C_in)]
                    for k in range(K)]
            xcol = taps[0] if K == 1 else jnp.concatenate(taps, axis=1)
            if lay["to_ct"]:
                # last down layer: emit (C_out, T_out) (lane-dense) directly
                y = _dot_f32(w, xcol, (((1,), (1,)), ((), ()))) + b  # b (C,1)
                ax = 1
            else:
                y = _dot_f32(xcol, w, (((1,), (0,)), ((), ()))) + b  # b (1,C)
                ax = 0
        else:
            # res-block conv, stride 1, (C, T) layout: T on the lane axis.
            T_in, C_in = lay["t_in"], lay["cin"]
            if pad > 0:
                left = [h[:, pad - i:pad - i + 1] for i in range(pad)]
                right = [h[:, T_in - 2 - i:T_in - 1 - i] for i in range(pad)]
                hp = jnp.concatenate(left + [h] + right, axis=1)
            else:
                hp = h
            taps = [hp[:, k:k + T_in] for k in range(K)]
            xcol = taps[0] if K == 1 else jnp.concatenate(taps, axis=0)
            y = _dot_f32(w, xcol, (((1,), (0,)), ((), ()))) + b      # b (C,1)
            ax = 1

        # InstanceNorm1d (affine=False): two-pass statistics, f32 epilogue.
        mean = jnp.mean(y, axis=ax, keepdims=True)
        d = y - mean
        var = jnp.mean(d * d, axis=ax, keepdims=True)
        y = d * jax.lax.rsqrt(var + EPS)

        if lay["acti"]:
            y = jnp.where(y >= 0.0, y, LRELU_SLOPE * y)
        if lay["res_add"]:
            y = y + res
        h = y

    out_ref[0] = h.astype(out_ref.dtype)


def _const_index_map(ndim):
    return lambda b: (0,) * ndim


# ----------------------------------------------------------------------------
# Wrapper: one entry transpose, one fused pallas_call, no exit transpose.
# ----------------------------------------------------------------------------
def encoder_content_forward(x, params, kernel_size, stride):
    """x: (B, C0, T0) float32 -- same NCL convention as the PyTorch module."""
    B, C0, T0 = map(int, x.shape)
    K = int(kernel_size)
    pad = (K - 1) // 2
    n_down = len(params["down"])

    op_inputs = []

    def _add(a):
        op_inputs.append(jnp.asarray(a, jnp.float32))
        return len(op_inputs) - 1

    plan = []
    flops = 0
    T, C = T0, C0
    for i, (w, b) in enumerate(params["down"]):
        C_out = int(w.shape[0])
        assert tuple(w.shape) == (C_out, C, K)
        T_out = (T + 2 * pad - K) // int(stride) + 1
        to_ct = (i == n_down - 1)            # last down layer emits (C, T)
        if to_ct:
            w2 = jnp.transpose(w, (0, 2, 1)).reshape(C_out, K * C)
            b2 = jnp.reshape(b, (C_out, 1))
        else:
            w2 = jnp.transpose(w, (2, 1, 0)).reshape(K * C, C_out)
            b2 = jnp.reshape(b, (1, C_out))
        plan.append(dict(kind="down", w=_add(w2), b=_add(b2), k=K,
                         stride=int(stride), cin=C, cout=C_out, t_in=T,
                         t_out=T_out, to_ct=to_ct, acti=True,
                         res_save=False, res_add=False))
        flops += 2 * K * C * C_out * T_out
        T, C = T_out, C_out

    for (w1, b1, w2_, b2_) in params["res"]:
        for j, (w, b) in enumerate(((w1, b1), (w2_, b2_))):
            C_out = int(w.shape[0])
            assert tuple(w.shape) == (C_out, C, K)
            wv = jnp.transpose(w, (0, 2, 1)).reshape(C_out, K * C)
            bv = jnp.reshape(b, (C_out, 1))
            plan.append(dict(kind="res", w=_add(wv), b=_add(bv), k=K, stride=1,
                             cin=C, cout=C_out, t_in=T, t_out=T, to_ct=True,
                             acti=(j == 0), res_save=(j == 0),
                             res_add=(j == 1)))
            flops += 2 * K * C * C_out * T
            C = C_out

    C_f, T_f = C, T

    # Single entry layout change: time on sublanes for the strided down convs.
    x_in = (jnp.transpose(x, (0, 2, 1)) if n_down > 0 else x).astype(jnp.float32)

    in_specs = [pl.BlockSpec((1,) + tuple(x_in.shape[1:]),
                             lambda bb: (bb, 0, 0))]
    in_specs += [pl.BlockSpec(tuple(a.shape), _const_index_map(a.ndim))
                 for a in op_inputs]

    down_cins = [l["cin"] for l in plan if l["kind"] == "down"]
    scratch_rows = max(8, T0 + 2 * pad) if down_cins else 8
    scratch_cols = max(8, max(down_cins)) if down_cins else 8

    # Explicit VMEM budget (re-derived; generous headroom for in-flight
    # activations / im2col temporaries, capped well under v7x's 64 MiB).
    est_bytes = 4 * (2 * int(np.prod(x_in.shape[1:]))
                     + sum(int(np.prod(a.shape)) for a in op_inputs)
                     + 2 * C_f * T_f + scratch_rows * scratch_cols)
    vmem_limit = int(min(64 * 2 ** 20, max(16 * 2 ** 20, 8 * est_bytes)))

    cost = pl.CostEstimate(
        flops=int(B * flops),
        transcendentals=int(B * sum(l["cout"] for l in plan)),
        bytes_accessed=int(4 * (int(np.prod(x_in.shape)) + B * C_f * T_f
                                + sum(int(np.prod(a.shape)) for a in op_inputs))))

    out = pl.pallas_call(
        functools.partial(_fused_encoder_kernel, plan=tuple(plan), pad=pad),
        out_shape=jax.ShapeDtypeStruct((B, C_f, T_f), x.dtype),
        grid=(B,),
        in_specs=in_specs,
        out_specs=pl.BlockSpec((1, C_f, T_f), lambda bb: (bb, 0, 0)),
        scratch_shapes=[pltpu.VMEM((scratch_rows, scratch_cols), jnp.float32)],
        compiler_params=pltpu.CompilerParams(
            dimension_semantics=("parallel",),
            vmem_limit_bytes=vmem_limit),
        cost_estimate=cost,
    )(x_in, *op_inputs)
    return out                            # (B, C_f, T_f) -- module NCL layout


# ----------------------------------------------------------------------------
# Deterministic parameter init (torch Conv1d weight layout: (C_out, C_in, K)).
# ----------------------------------------------------------------------------
def init_params(key, channels, kernel_size, n_convs, n_resblk):
    assert n_convs + 1 == len(channels)
    params = {"down": [], "res": []}
    for i in range(n_convs):
        key, k1, k2 = jax.random.split(key, 3)
        w = 0.1 * jax.random.normal(
            k1, (channels[i + 1], channels[i], kernel_size), jnp.float32)
        b = 0.1 * jax.random.normal(k2, (channels[i + 1],), jnp.float32)
        params["down"].append((w, b))
    c = channels[-1]
    for _ in range(n_resblk):
        key, k1, k2, k3, k4 = jax.random.split(key, 5)
        w1 = 0.1 * jax.random.normal(k1, (c, c, kernel_size), jnp.float32)
        b1 = 0.1 * jax.random.normal(k2, (c,), jnp.float32)
        w2 = 0.1 * jax.random.normal(k3, (c, c, kernel_size), jnp.float32)
        b2 = 0.1 * jax.random.normal(k4, (c,), jnp.float32)
        params["res"].append((w1, b1, w2, b2))
    return params


# ----------------------------------------------------------------------------
# Pure numpy (float64) reference of the assumed ConvBlock/ResBlock stack.
# ----------------------------------------------------------------------------
def _reference_forward_np(x, params, kernel_size, stride):
    pad = (kernel_size - 1) // 2

    def conv_block(h, w, b, s, acti):
        B, C_in, T = h.shape
        C_out = w.shape[0]
        hp = np.pad(h, ((0, 0), (0, 0), (pad, pad)), mode="reflect")
        T_out = (T + 2 * pad - kernel_size) // s + 1
        y = np.zeros((B, C_out, T_out), np.float64)
        for u in range(T_out):
            seg = hp[:, :, u * s:u * s + kernel_size]          # (B, C_in, K)
            y[:, :, u] = np.einsum("bck,ock->bo", seg, w) + b
        mean = y.mean(axis=2, keepdims=True)
        var = y.var(axis=2, keepdims=True)                     # biased
        y = (y - mean) / np.sqrt(var + EPS)
        if acti:
            y = np.where(y >= 0.0, y, LRELU_SLOPE * y)
        return y

    h = np.asarray(x, np.float64)
    for (w, b) in params["down"]:
        h = conv_block(h, np.asarray(w, np.float64),
                       np.asarray(b, np.float64), stride, True)
    for (w1, b1, w2, b2) in params["res"]:
        r = h
        h1 = conv_block(h, np.asarray(w1, np.float64),
                        np.asarray(b1, np.float64), 1, True)
        h = conv_block(h1, np.asarray(w2, np.float64),
                       np.asarray(b2, np.float64), 1, False) + r
    return h


if __name__ == "__main__":
    # config: enc_co_channels=[4, 8, 16], enc_co_kernel_size=3, enc_co_stride=2,
    #         enc_co_down_n=2, enc_co_resblks=2
    channels = [4, 8, 16]
    kernel_size = 3
    stride = 2
    n_convs = 2
    n_resblk = 2

    key = jax.random.PRNGKey(0)
    key, xk = jax.random.split(key)
    x = jax.random.normal(xk, (2, channels[0], 16), jnp.float32)   # (B, C, T)

    params = init_params(key, channels, kernel_size, n_convs, n_resblk)

    out = encoder_content_forward(x, params, kernel_size, stride)
    out = jax.block_until_ready(out)

    assert out.shape == (2, channels[-1], 16 // (stride ** n_convs)), out.shape

    ref = _reference_forward_np(np.asarray(x), params, kernel_size, stride)
    err = float(np.max(np.abs(np.asarray(out, np.float64) - ref)))
    assert err < 5e-3, f"max abs error vs reference: {err}"

    print("KERNEL_OK")
</pallas_src>

<mosaic_0001>
module attributes {stable_mosaic.version = 11 : i64} {
  func.func @_fused_encoder_kernel(%arg0: i32, %arg1: memref<1x16x4xf32, #tpu.memory_space<vmem>>, %arg2: memref<12x8xf32, #tpu.memory_space<vmem>>, %arg3: memref<1x8xf32, #tpu.memory_space<vmem>>, %arg4: memref<16x24xf32, #tpu.memory_space<vmem>>, %arg5: memref<16x1xf32, #tpu.memory_space<vmem>>, %arg6: memref<16x48xf32, #tpu.memory_space<vmem>>, %arg7: memref<16x1xf32, #tpu.memory_space<vmem>>, %arg8: memref<16x48xf32, #tpu.memory_space<vmem>>, %arg9: memref<16x1xf32, #tpu.memory_space<vmem>>, %arg10: memref<16x48xf32, #tpu.memory_space<vmem>>, %arg11: memref<16x1xf32, #tpu.memory_space<vmem>>, %arg12: memref<16x48xf32, #tpu.memory_space<vmem>>, %arg13: memref<16x1xf32, #tpu.memory_space<vmem>>, %arg14: memref<1x16x4xf32, #tpu.memory_space<vmem>>, %arg15: memref<18x8xf32, #tpu.memory_space<vmem>>) attributes {dimension_semantics = [#tpu.dimension_semantics<parallel>], iteration_bounds = array<i64: 2>, scalar_prefetch = 0 : i64, scratch_operands = 1 : i64, tpu.core_type = #tpu.core_type<tc>, window_params = [{transform_indices = @transform_0, window_bounds = array<i64: 1, 16, 4>}, {pipeline_mode = #tpu.pipeline_mode<synchronous>, transform_indices = @transform_1, window_bounds = array<i64: 12, 8>}, {pipeline_mode = #tpu.pipeline_mode<synchronous>, transform_indices = @transform_2, window_bounds = array<i64: 1, 8>}, {pipeline_mode = #tpu.pipeline_mode<synchronous>, transform_indices = @transform_3, window_bounds = array<i64: 16, 24>}, {pipeline_mode = #tpu.pipeline_mode<synchronous>, transform_indices = @transform_4, window_bounds = array<i64: 16, 1>}, {pipeline_mode = #tpu.pipeline_mode<synchronous>, transform_indices = @transform_5, window_bounds = array<i64: 16, 48>}, {pipeline_mode = #tpu.pipeline_mode<synchronous>, transform_indices = @transform_6, window_bounds = array<i64: 16, 1>}, {pipeline_mode = #tpu.pipeline_mode<synchronous>, transform_indices = @transform_7, window_bounds = array<i64: 16, 48>}, {pipeline_mode = #tpu.pipeline_mode<synchronous>, transform_indices = @transform_8, window_bounds = array<i64: 16, 1>}, {pipeline_mode = #tpu.pipeline_mode<synchronous>, transform_indices = @transform_9, window_bounds = array<i64: 16, 48>}, {pipeline_mode = #tpu.pipeline_mode<synchronous>, transform_indices = @transform_10, window_bounds = array<i64: 16, 1>}, {pipeline_mode = #tpu.pipeline_mode<synchronous>, transform_indices = @transform_11, window_bounds = array<i64: 16, 48>}, {pipeline_mode = #tpu.pipeline_mode<synchronous>, transform_indices = @transform_12, window_bounds = array<i64: 16, 1>}, {transform_indices = @transform_13, window_bounds = array<i64: 1, 16, 4>}]} {
    %c0 = arith.constant 0 : index
    %c0_0 = arith.constant 0 : index
    %c0_1 = arith.constant 0 : index
    %0 = vector.load %arg1[%c0, %c0_0, %c0_1] : memref<1x16x4xf32, #tpu.memory_space<vmem>>, vector<1x16x4xf32>
    %1 = vector.shape_cast %0 : vector<1x16x4xf32> to vector<16x4xf32>
    %c0_2 = arith.constant 0 : index
    %c0_3 = arith.constant 0 : index
    %2 = vector.load %arg2[%c0_2, %c0_3] : memref<12x8xf32, #tpu.memory_space<vmem>>, vector<12x8xf32>
    %c0_4 = arith.constant 0 : index
    %c0_5 = arith.constant 0 : index
    %3 = vector.load %arg3[%c0_4, %c0_5] : memref<1x8xf32, #tpu.memory_space<vmem>>, vector<1x8xf32>
    %c1 = arith.constant 1 : index
    %c0_6 = arith.constant 0 : index
    %4 = vector.load %arg15[%c1, %c0_6] : memref<18x8xf32, #tpu.memory_space<vmem>>, vector<16x4xf32>
    tpu.vector_store %arg15[%c1, %c0_6], %1 {strides = array<i32>} : memref<18x8xf32, #tpu.memory_space<vmem>>, vector<16x4xf32>,
    %5 = vector.extract_strided_slice %1 {offsets = [1, 0], sizes = [1, 4], strides = [1, 1]} : vector<16x4xf32> to vector<1x4xf32>
    %c0_7 = arith.constant 0 : index
    %c0_8 = arith.constant 0 : index
    %6 = vector.load %arg15[%c0_7, %c0_8] : memref<18x8xf32, #tpu.memory_space<vmem>>, vector<1x4xf32>
    tpu.vector_store %arg15[%c0_7, %c0_8], %5 {strides = array<i32>} : memref<18x8xf32, #tpu.memory_space<vmem>>, vector<1x4xf32>,
    %7 = vector.extract_strided_slice %1 {offsets = [14, 0], sizes = [1, 4], strides = [1, 1]} : vector<16x4xf32> to vector<1x4xf32>
    %c17 = arith.constant 17 : index
    %c0_9 = arith.constant 0 : index
    %8 = vector.load %arg15[%c17, %c0_9] : memref<18x8xf32, #tpu.memory_space<vmem>>, vector<1x4xf32>
    tpu.vector_store %arg15[%c17, %c0_9], %7 {strides = array<i32>} : memref<18x8xf32, #tpu.memory_space<vmem>>, vector<1x4xf32>,
    %c0_10 = arith.constant 0 : index
    %c0_11 = arith.constant 0 : index
    %9 = tpu.strided_load %arg15[%c0_10, %c0_11] {strides = array<i32: 2, 1>} : memref<18x8xf32, #tpu.memory_space<vmem>>, vector<8x4xf32>
    %c1_12 = arith.constant 1 : index
    %c0_13 = arith.constant 0 : index
    %10 = tpu.strided_load %arg15[%c1_12, %c0_13] {strides = array<i32: 2, 1>} : memref<18x8xf32, #tpu.memory_space<vmem>>, vector<8x4xf32>
    %c2 = arith.constant 2 : index
    %c0_14 = arith.constant 0 : index
    %11 = tpu.strided_load %arg15[%c2, %c0_14] {strides = array<i32: 2, 1>} : memref<18x8xf32, #tpu.memory_space<vmem>>, vector<8x4xf32>
    %12 = tpu.concatenate %9, %10, %11 in 1 : vector<8x4xf32>, vector<8x4xf32>, vector<8x4xf32> -> vector<8x12xf32>
    %13 = arith.truncf %12 : vector<8x12xf32> to vector<8x12xbf16>
    %14 = arith.truncf %2 : vector<12x8xf32> to vector<12x8xbf16>
    %15 = arith.extf %13 : vector<8x12xbf16> to vector<8x12xf32>
    %16 = arith.subf %12, %15 : vector<8x12xf32>
    %17 = arith.truncf %16 : vector<8x12xf32> to vector<8x12xbf16>
    %18 = arith.extf %14 : vector<12x8xbf16> to vector<12x8xf32>
    %19 = arith.subf %2, %18 : vector<12x8xf32>
    %20 = arith.truncf %19 : vector<12x8xf32> to vector<12x8xbf16>
    %cst = arith.constant dense<0.000000e+00> : vector<8x8xf32>
    %21 = tpu.matmul %13, %14, %cst {dimension_numbers = #tpu.dot_dimension_numbers<[1], [0], [0], [1], [0, 0, 1, 1], [], []>} : vector<8x12xbf16>, vector<12x8xbf16>, vector<8x8xf32> -> vector<8x8xf32>
    %cst_15 = arith.constant dense<0.000000e+00> : vector<8x8xf32>
    %22 = tpu.matmul %17, %14, %cst_15 {dimension_numbers = #tpu.dot_dimension_numbers<[1], [0], [0], [1], [0, 0, 1, 1], [], []>} : vector<8x12xbf16>, vector<12x8xbf16>, vector<8x8xf32> -> vector<8x8xf32>
    %23 = arith.addf %21, %22 : vector<8x8xf32>
    %cst_16 = arith.constant dense<0.000000e+00> : vector<8x8xf32>
    %24 = tpu.matmul %13, %20, %cst_16 {dimension_numbers = #tpu.dot_dimension_numbers<[1], [0], [0], [1], [0, 0, 1, 1], [], []>} : vector<8x12xbf16>, vector<12x8xbf16>, vector<8x8xf32> -> vector<8x8xf32>
    %25 = arith.addf %23, %24 : vector<8x8xf32>
    %26 = vector.broadcast %3 : vector<1x8xf32> to vector<8x8xf32>
    %27 = arith.addf %25, %26 : vector<8x8xf32>
    %cst_17 = arith.constant dense<0.000000e+00> : vector<8xf32>
    %28 = vector.multi_reduction <add>, %27, %cst_17 [0] : vector<8x8xf32> to vector<8xf32>
    %29 = vector.shape_cast %28 : vector<8xf32> to vector<1x8xf32>
    %cst_18 = arith.constant 8.000000e+00 : f32
    %30 = vector.broadcast %cst_18 : f32 to vector<1x8xf32>
    %31 = arith.divf %29, %30 : vector<1x8xf32>
    %32 = vector.broadcast %31 : vector<1x8xf32> to vector<8x8xf32>
    %33 = arith.subf %27, %32 : vector<8x8xf32>
    %34 = arith.mulf %33, %33 : vector<8x8xf32>
    %cst_19 = arith.constant dense<0.000000e+00> : vector<8xf32>
    %35 = vector.multi_reduction <add>, %34, %cst_19 [0] : vector<8x8xf32> to vector<8xf32>
    %36 = vector.shape_cast %35 : vector<8xf32> to vector<1x8xf32>
    %cst_20 = arith.constant 8.000000e+00 : f32
    %37 = vector.broadcast %cst_20 : f32 to vector<1x8xf32>
    %38 = arith.divf %36, %37 : vector<1x8xf32>
    %cst_21 = arith.constant 9.99999974E-6 : f32
    %39 = vector.broadcast %cst_21 : f32 to vector<1x8xf32>
    %40 = arith.addf %38, %39 : vector<1x8xf32>
    %41 = math.rsqrt %40 : vector<1x8xf32>
    %42 = vector.broadcast %41 : vector<1x8xf32> to vector<8x8xf32>
    %43 = arith.mulf %33, %42 : vector<8x8xf32>
    %cst_22 = arith.constant 0.000000e+00 : f32
    %44 = vector.broadcast %cst_22 : f32 to vector<8x8xf32>
    %45 = arith.cmpf oge, %43, %44 : vector<8x8xf32>
    %cst_23 = arith.constant 2.000000e-01 : f32
    %46 = vector.broadcast %cst_23 : f32 to vector<8x8xf32>
    %47 = arith.mulf %46, %43 : vector<8x8xf32>
    %48 = arith.select %45, %43, %47 : vector<8x8xi1>, vector<8x8xf32>
    %c0_24 = arith.constant 0 : index
    %c0_25 = arith.constant 0 : index
    %49 = vector.load %arg4[%c0_24, %c0_25] : memref<16x24xf32, #tpu.memory_space<vmem>>, vector<16x24xf32>
    %c0_26 = arith.constant 0 : index
    %c0_27 = arith.constant 0 : index
    %50 = vector.load %arg5[%c0_26, %c0_27] : memref<16x1xf32, #tpu.memory_space<vmem>>, vector<16x1xf32>
    %c1_28 = arith.constant 1 : index
    %c0_29 = arith.constant 0 : index
    %51 = vector.load %arg15[%c1_28, %c0_29] : memref<18x8xf32, #tpu.memory_space<vmem>>, vector<8x8xf32>
    tpu.vector_store %arg15[%c1_28, %c0_29], %48 {strides = array<i32>} : memref<18x8xf32, #tpu.memory_space<vmem>>, vector<8x8xf32>,
    %52 = vector.extract_strided_slice %48 {offsets = [1, 0], sizes = [1, 8], strides = [1, 1]} : vector<8x8xf32> to vector<1x8xf32>
    %c0_30 = arith.constant 0 : index
    %c0_31 = arith.constant 0 : index
    %53 = vector.load %arg15[%c0_30, %c0_31] : memref<18x8xf32, #tpu.memory_space<vmem>>, vector<1x8xf32>
    tpu.vector_store %arg15[%c0_30, %c0_31], %52 {strides = array<i32>} : memref<18x8xf32, #tpu.memory_space<vmem>>, vector<1x8xf32>,
    %54 = vector.extract_strided_slice %48 {offsets = [6, 0], sizes = [1, 8], strides = [1, 1]} : vector<8x8xf32> to vector<1x8xf32>
    %c9 = arith.constant 9 : index
    %c0_32 = arith.constant 0 : index
    %55 = vector.load %arg15[%c9, %c0_32] : memref<18x8xf32, #tpu.memory_space<vmem>>, vector<1x8xf32>
    tpu.vector_store %arg15[%c9, %c0_32], %54 {strides = array<i32>} : memref<18x8xf32, #tpu.memory_space<vmem>>, vector<1x8xf32>,
    %c0_33 = arith.constant 0 : index
    %c0_34 = arith.constant 0 : index
    %56 = tpu.strided_load %arg15[%c0_33, %c0_34] {strides = array<i32: 2, 1>} : memref<18x8xf32, #tpu.memory_space<vmem>>, vector<4x8xf32>
    %c1_35 = arith.constant 1 : index
    %c0_36 = arith.constant 0 : index
    %57 = tpu.strided_load %arg15[%c1_35, %c0_36] {strides = array<i32: 2, 1>} : memref<18x8xf32, #tpu.memory_space<vmem>>, vector<4x8xf32>
    %c2_37 = arith.constant 2 : index
    %c0_38 = arith.constant 0 : index
    %58 = tpu.strided_load %arg15[%c2_37, %c0_38] {strides = array<i32: 2, 1>} : memref<18x8xf32, #tpu.memory_space<vmem>>, vector<4x8xf32>
    %59 = tpu.concatenate %56, %57, %58 in 1 : vector<4x8xf32>, vector<4x8xf32>, vector<4x8xf32> -> vector<4x24xf32>
    %60 = arith.truncf %49 : vector<16x24xf32> to vector<16x24xbf16>
    %61 = arith.truncf %59 : vector<4x24xf32> to vector<4x24xbf16>
    %62 = arith.extf %60 : vector<16x24xbf16> to vector<16x24xf32>
    %63 = arith.subf %49, %62 : vector<16x24xf32>
    %64 = arith.truncf %63 : vector<16x24xf32> to vector<16x24xbf16>
    %65 = arith.extf %61 : vector<4x24xbf16> to vector<4x24xf32>
    %66 = arith.subf %59, %65 : vector<4x24xf32>
    %67 = arith.truncf %66 : vector<4x24xf32> to vector<4x24xbf16>
    %cst_39 = arith.constant dense<0.000000e+00> : vector<16x4xf32>
    %68 = tpu.matmul %60, %61, %cst_39 {dimension_numbers = #tpu.dot_dimension_numbers<[1], [1], [0], [0], [0, 0, 1, 0], [], []>} : vector<16x24xbf16>, vector<4x24xbf16>, vector<16x4xf32> -> vector<16x4xf32>
    %cst_40 = arith.constant dense<0.000000e+00> : vector<16x4xf32>
    %69 = tpu.matmul %64, %61, %cst_40 {dimension_numbers = #tpu.dot_dimension_numbers<[1], [1], [0], [0], [0, 0, 1, 0], [], []>} : vector<16x24xbf16>, vector<4x24xbf16>, vector<16x4xf32> -> vector<16x4xf32>
    %70 = arith.addf %68, %69 : vector<16x4xf32>
    %cst_41 = arith.constant dense<0.000000e+00> : vector<16x4xf32>
    %71 = tpu.matmul %60, %67, %cst_41 {dimension_numbers = #tpu.dot_dimension_numbers<[1], [1], [0], [0], [0, 0, 1, 0], [], []>} : vector<16x24xbf16>, vector<4x24xbf16>, vector<16x4xf32> -> vector<16x4xf32>
    %72 = arith.addf %70, %71 : vector<16x4xf32>
    %73 = vector.broadcast %50 : vector<16x1xf32> to vector<16x4xf32>
    %74 = arith.addf %72, %73 : vector<16x4xf32>
    %cst_42 = arith.constant dense<0.000000e+00> : vector<16xf32>
    %75 = vector.multi_reduction <add>, %74, %cst_42 [1] : vector<16x4xf32> to vector<16xf32>
    %76 = vector.shape_cast %75 : vector<16xf32> to vector<16x1xf32>
    %cst_43 = arith.constant 4.000000e+00 : f32
    %77 = vector.broadcast %cst_43 : f32 to vector<16x1xf32>
    %78 = arith.divf %76, %77 : vector<16x1xf32>
    %79 = vector.broadcast %78 : vector<16x1xf32> to vector<16x4xf32>
    %80 = arith.subf %74, %79 : vector<16x4xf32>
    %81 = arith.mulf %80, %80 : vector<16x4xf32>
    %cst_44 = arith.constant dense<0.000000e+00> : vector<16xf32>
    %82 = vector.multi_reduction <add>, %81, %cst_44 [1] : vector<16x4xf32> to vector<16xf32>
    %83 = vector.shape_cast %82 : vector<16xf32> to vector<16x1xf32>
    %cst_45 = arith.constant 4.000000e+00 : f32
    %84 = vector.broadcast %cst_45 : f32 to vector<16x1xf32>
    %85 = arith.divf %83, %84 : vector<16x1xf32>
    %cst_46 = arith.constant 9.99999974E-6 : f32
    %86 = vector.broadcast %cst_46 : f32 to vector<16x1xf32>
    %87 = arith.addf %85, %86 : vector<16x1xf32>
    %88 = math.rsqrt %87 : vector<16x1xf32>
    %89 = vector.broadcast %88 : vector<16x1xf32> to vector<16x4xf32>
    %90 = arith.mulf %80, %89 : vector<16x4xf32>
    %cst_47 = arith.constant 0.000000e+00 : f32
    %91 = vector.broadcast %cst_47 : f32 to vector<16x4xf32>
    %92 = arith.cmpf oge, %90, %91 : vector<16x4xf32>
    %cst_48 = arith.constant 2.000000e-01 : f32
    %93 = vector.broadcast %cst_48 : f32 to vector<16x4xf32>
    %94 = arith.mulf %93, %90 : vector<16x4xf32>
    %95 = arith.select %92, %90, %94 : vector<16x4xi1>, vector<16x4xf32>
    %c0_49 = arith.constant 0 : index
    %c0_50 = arith.constant 0 : index
    %96 = vector.load %arg6[%c0_49, %c0_50] : memref<16x48xf32, #tpu.memory_space<vmem>>, vector<16x48xf32>
    %c0_51 = arith.constant 0 : index
    %c0_52 = arith.constant 0 : index
    %97 = vector.load %arg7[%c0_51, %c0_52] : memref<16x1xf32, #tpu.memory_space<vmem>>, vector<16x1xf32>
    %98 = vector.extract_strided_slice %95 {offsets = [0, 1], sizes = [16, 1], strides = [1, 1]} : vector<16x4xf32> to vector<16x1xf32>
    %99 = vector.extract_strided_slice %95 {offsets = [0, 2], sizes = [16, 1], strides = [1, 1]} : vector<16x4xf32> to vector<16x1xf32>
    %100 = tpu.concatenate %98, %95, %99 in 1 : vector<16x1xf32>, vector<16x4xf32>, vector<16x1xf32> -> vector<16x6xf32>
    %101 = vector.extract_strided_slice %100 {offsets = [0, 0], sizes = [16, 4], strides = [1, 1]} : vector<16x6xf32> to vector<16x4xf32>
    %102 = vector.extract_strided_slice %100 {offsets = [0, 1], sizes = [16, 4], strides = [1, 1]} : vector<16x6xf32> to vector<16x4xf32>
    %103 = vector.extract_strided_slice %100 {offsets = [0, 2], sizes = [16, 4], strides = [1, 1]} : vector<16x6xf32> to vector<16x4xf32>
    %104 = tpu.concatenate %101, %102, %103 in 0 : vector<16x4xf32>, vector<16x4xf32>, vector<16x4xf32> -> vector<48x4xf32>
    %105 = arith.truncf %96 : vector<16x48xf32> to vector<16x48xbf16>
    %106 = arith.truncf %104 : vector<48x4xf32> to vector<48x4xbf16>
    %107 = arith.extf %105 : vector<16x48xbf16> to vector<16x48xf32>
    %108 = arith.subf %96, %107 : vector<16x48xf32>
    %109 = arith.truncf %108 : vector<16x48xf32> to vector<16x48xbf16>
    %110 = arith.extf %106 : vector<48x4xbf16> to vector<48x4xf32>
    %111 = arith.subf %104, %110 : vector<48x4xf32>
    %112 = arith.truncf %111 : vector<48x4xf32> to vector<48x4xbf16>
    %cst_53 = arith.constant dense<0.000000e+00> : vector<16x4xf32>
    %113 = tpu.matmul %105, %106, %cst_53 {dimension_numbers = #tpu.dot_dimension_numbers<[1], [0], [0], [1], [0, 0, 1, 1], [], []>} : vector<16x48xbf16>, vector<48x4xbf16>, vector<16x4xf32> -> vector<16x4xf32>
    %cst_54 = arith.constant dense<0.000000e+00> : vector<16x4xf32>
    %114 = tpu.matmul %109, %106, %cst_54 {dimension_numbers = #tpu.dot_dimension_numbers<[1], [0], [0], [1], [0, 0, 1, 1], [], []>} : vector<16x48xbf16>, vector<48x4xbf16>, vector<16x4xf32> -> vector<16x4xf32>
    %115 = arith.addf %113, %114 : vector<16x4xf32>
    %cst_55 = arith.constant dense<0.000000e+00> : vector<16x4xf32>
    %116 = tpu.matmul %105, %112, %cst_55 {dimension_numbers = #tpu.dot_dimension_numbers<[1], [0], [0], [1], [0, 0, 1, 1], [], []>} : vector<16x48xbf16>, vector<48x4xbf16>, vector<16x4xf32> -> vector<16x4xf32>
    %117 = arith.addf %115, %116 : vector<16x4xf32>
    %118 = vector.broadcast %97 : vector<16x1xf32> to vector<16x4xf32>
    %119 = arith.addf %117, %118 : vector<16x4xf32>
    %cst_56 = arith.constant dense<0.000000e+00> : vector<16xf32>
    %120 = vector.multi_reduction <add>, %119, %cst_56 [1] : vector<16x4xf32> to vector<16xf32>
    %121 = vector.shape_cast %120 : vector<16xf32> to vector<16x1xf32>
    %cst_57 = arith.constant 4.000000e+00 : f32
    %122 = vector.broadcast %cst_57 : f32 to vector<16x1xf32>
    %123 = arith.divf %121, %122 : vector<16x1xf32>
    %124 = vector.broadcast %123 : vector<16x1xf32> to vector<16x4xf32>
    %125 = arith.subf %119, %124 : vector<16x4xf32>
    %126 = arith.mulf %125, %125 : vector<16x4xf32>
    %cst_58 = arith.constant dense<0.000000e+00> : vector<16xf32>
    %127 = vector.multi_reduction <add>, %126, %cst_58 [1] : vector<16x4xf32> to vector<16xf32>
    %128 = vector.shape_cast %127 : vector<16xf32> to vector<16x1xf32>
    %cst_59 = arith.constant 4.000000e+00 : f32
    %129 = vector.broadcast %cst_59 : f32 to vector<16x1xf32>
    %130 = arith.divf %128, %129 : vector<16x1xf32>
    %cst_60 = arith.constant 9.99999974E-6 : f32
    %131 = vector.broadcast %cst_60 : f32 to vector<16x1xf32>
    %132 = arith.addf %130, %131 : vector<16x1xf32>
    %133 = math.rsqrt %132 : vector<16x1xf32>
    %134 = vector.broadcast %133 : vector<16x1xf32> to vector<16x4xf32>
    %135 = arith.mulf %125, %134 : vector<16x4xf32>
    %cst_61 = arith.constant 0.000000e+00 : f32
    %136 = vector.broadcast %cst_61 : f32 to vector<16x4xf32>
    %137 = arith.cmpf oge, %135, %136 : vector<16x4xf32>
    %cst_62 = arith.constant 2.000000e-01 : f32
    %138 = vector.broadcast %cst_62 : f32 to vector<16x4xf32>
    %139 = arith.mulf %138, %135 : vector<16x4xf32>
    %140 = arith.select %137, %135, %139 : vector<16x4xi1>, vector<16x4xf32>
    %c0_63 = arith.constant 0 : index
    %c0_64 = arith.constant 0 : index
    %141 = vector.load %arg8[%c0_63, %c0_64] : memref<16x48xf32, #tpu.memory_space<vmem>>, vector<16x48xf32>
    %c0_65 = arith.constant 0 : index
    %c0_66 = arith.constant 0 : index
    %142 = vector.load %arg9[%c0_65, %c0_66] : memref<16x1xf32, #tpu.memory_space<vmem>>, vector<16x1xf32>
    %143 = vector.extract_strided_slice %140 {offsets = [0, 1], sizes = [16, 1], strides = [1, 1]} : vector<16x4xf32> to vector<16x1xf32>
    %144 = vector.extract_strided_slice %140 {offsets = [0, 2], sizes = [16, 1], strides = [1, 1]} : vector<16x4xf32> to vector<16x1xf32>
    %145 = tpu.concatenate %143, %140, %144 in 1 : vector<16x1xf32>, vector<16x4xf32>, vector<16x1xf32> -> vector<16x6xf32>
    %146 = vector.extract_strided_slice %145 {offsets = [0, 0], sizes = [16, 4], strides = [1, 1]} : vector<16x6xf32> to vector<16x4xf32>
    %147 = vector.extract_strided_slice %145 {offsets = [0, 1], sizes = [16, 4], strides = [1, 1]} : vector<16x6xf32> to vector<16x4xf32>
    %148 = vector.extract_strided_slice %145 {offsets = [0, 2], sizes = [16, 4], strides = [1, 1]} : vector<16x6xf32> to vector<16x4xf32>
    %149 = tpu.concatenate %146, %147, %148 in 0 : vector<16x4xf32>, vector<16x4xf32>, vector<16x4xf32> -> vector<48x4xf32>
    %150 = arith.truncf %141 : vector<16x48xf32> to vector<16x48xbf16>
    %151 = arith.truncf %149 : vector<48x4xf32> to vector<48x4xbf16>
    %152 = arith.extf %150 : vector<16x48xbf16> to vector<16x48xf32>
    %153 = arith.subf %141, %152 : vector<16x48xf32>
    %154 = arith.truncf %153 : vector<16x48xf32> to vector<16x48xbf16>
    %155 = arith.extf %151 : vector<48x4xbf16> to vector<48x4xf32>
    %156 = arith.subf %149, %155 : vector<48x4xf32>
    %157 = arith.truncf %156 : vector<48x4xf32> to vector<48x4xbf16>
    %cst_67 = arith.constant dense<0.000000e+00> : vector<16x4xf32>
    %158 = tpu.matmul %150, %151, %cst_67 {dimension_numbers = #tpu.dot_dimension_numbers<[1], [0], [0], [1], [0, 0, 1, 1], [], []>} : vector<16x48xbf16>, vector<48x4xbf16>, vector<16x4xf32> -> vector<16x4xf32>
    %cst_68 = arith.constant dense<0.000000e+00> : vector<16x4xf32>
    %159 = tpu.matmul %154, %151, %cst_68 {dimension_numbers = #tpu.dot_dimension_numbers<[1], [0], [0], [1], [0, 0, 1, 1], [], []>} : vector<16x48xbf16>, vector<48x4xbf16>, vector<16x4xf32> -> vector<16x4xf32>
    %160 = arith.addf %158, %159 : vector<16x4xf32>
    %cst_69 = arith.constant dense<0.000000e+00> : vector<16x4xf32>
    %161 = tpu.matmul %150, %157, %cst_69 {dimension_numbers = #tpu.dot_dimension_numbers<[1], [0], [0], [1], [0, 0, 1, 1], [], []>} : vector<16x48xbf16>, vector<48x4xbf16>, vector<16x4xf32> -> vector<16x4xf32>
    %162 = arith.addf %160, %161 : vector<16x4xf32>
    %163 = vector.broadcast %142 : vector<16x1xf32> to vector<16x4xf32>
    %164 = arith.addf %162, %163 : vector<16x4xf32>
    %cst_70 = arith.constant dense<0.000000e+00> : vector<16xf32>
    %165 = vector.multi_reduction <add>, %164, %cst_70 [1] : vector<16x4xf32> to vector<16xf32>
    %166 = vector.shape_cast %165 : vector<16xf32> to vector<16x1xf32>
    %cst_71 = arith.constant 4.000000e+00 : f32
    %167 = vector.broadcast %cst_71 : f32 to vector<16x1xf32>
    %168 = arith.divf %166, %167 : vector<16x1xf32>
    %169 = vector.broadcast %168 : vector<16x1xf32> to vector<16x4xf32>
    %170 = arith.subf %164, %169 : vector<16x4xf32>
    %171 = arith.mulf %170, %170 : vector<16x4xf32>
    %cst_72 = arith.constant dense<0.000000e+00> : vector<16xf32>
    %172 = vector.multi_reduction <add>, %171, %cst_72 [1] : vector<16x4xf32> to vector<16xf32>
    %173 = vector.shape_cast %172 : vector<16xf32> to vector<16x1xf32>
    %cst_73 = arith.constant 4.000000e+00 : f32
    %174 = vector.broadcast %cst_73 : f32 to vector<16x1xf32>
    %175 = arith.divf %173, %174 : vector<16x1xf32>
    %cst_74 = arith.constant 9.99999974E-6 : f32
    %176 = vector.broadcast %cst_74 : f32 to vector<16x1xf32>
    %177 = arith.addf %175, %176 : vector<16x1xf32>
    %178 = math.rsqrt %177 : vector<16x1xf32>
    %179 = vector.broadcast %178 : vector<16x1xf32> to vector<16x4xf32>
    %180 = arith.mulf %170, %179 : vector<16x4xf32>
    %181 = arith.addf %180, %95 : vector<16x4xf32>
    %c0_75 = arith.constant 0 : index
    %c0_76 = arith.constant 0 : index
    %182 = vector.load %arg10[%c0_75, %c0_76] : memref<16x48xf32, #tpu.memory_space<vmem>>, vector<16x48xf32>
    %c0_77 = arith.constant 0 : index
    %c0_78 = arith.constant 0 : index
    %183 = vector.load %arg11[%c0_77, %c0_78] : memref<16x1xf32, #tpu.memory_space<vmem>>, vector<16x1xf32>
    %184 = vector.extract_strided_slice %181 {offsets = [0, 1], sizes = [16, 1], strides = [1, 1]} : vector<16x4xf32> to vector<16x1xf32>
    %185 = vector.extract_strided_slice %181 {offsets = [0, 2], sizes = [16, 1], strides = [1, 1]} : vector<16x4xf32> to vector<16x1xf32>
    %186 = tpu.concatenate %184, %181, %185 in 1 : vector<16x1xf32>, vector<16x4xf32>, vector<16x1xf32> -> vector<16x6xf32>
    %187 = vector.extract_strided_slice %186 {offsets = [0, 0], sizes = [16, 4], strides = [1, 1]} : vector<16x6xf32> to vector<16x4xf32>
    %188 = vector.extract_strided_slice %186 {offsets = [0, 1], sizes = [16, 4], strides = [1, 1]} : vector<16x6xf32> to vector<16x4xf32>
    %189 = vector.extract_strided_slice %186 {offsets = [0, 2], sizes = [16, 4], strides = [1, 1]} : vector<16x6xf32> to vector<16x4xf32>
    %190 = tpu.concatenate %187, %188, %189 in 0 : vector<16x4xf32>, vector<16x4xf32>, vector<16x4xf32> -> vector<48x4xf32>
    %191 = arith.truncf %182 : vector<16x48xf32> to vector<16x48xbf16>
    %192 = arith.truncf %190 : vector<48x4xf32> to vector<48x4xbf16>
    %193 = arith.extf %191 : vector<16x48xbf16> to vector<16x48xf32>
    %194 = arith.subf %182, %193 : vector<16x48xf32>
    %195 = arith.truncf %194 : vector<16x48xf32> to vector<16x48xbf16>
    %196 = arith.extf %192 : vector<48x4xbf16> to vector<48x4xf32>
    %197 = arith.subf %190, %196 : vector<48x4xf32>
    %198 = arith.truncf %197 : vector<48x4xf32> to vector<48x4xbf16>
    %cst_79 = arith.constant dense<0.000000e+00> : vector<16x4xf32>
    %199 = tpu.matmul %191, %192, %cst_79 {dimension_numbers = #tpu.dot_dimension_numbers<[1], [0], [0], [1], [0, 0, 1, 1], [], []>} : vector<16x48xbf16>, vector<48x4xbf16>, vector<16x4xf32> -> vector<16x4xf32>
    %cst_80 = arith.constant dense<0.000000e+00> : vector<16x4xf32>
    %200 = tpu.matmul %195, %192, %cst_80 {dimension_numbers = #tpu.dot_dimension_numbers<[1], [0], [0], [1], [0, 0, 1, 1], [], []>} : vector<16x48xbf16>, vector<48x4xbf16>, vector<16x4xf32> -> vector<16x4xf32>
    %201 = arith.addf %199, %200 : vector<16x4xf32>
    %cst_81 = arith.constant dense<0.000000e+00> : vector<16x4xf32>
    %202 = tpu.matmul %191, %198, %cst_81 {dimension_numbers = #tpu.dot_dimension_numbers<[1], [0], [0], [1], [0, 0, 1, 1], [], []>} : vector<16x48xbf16>, vector<48x4xbf16>, vector<16x4xf32> -> vector<16x4xf32>
    %203 = arith.addf %201, %202 : vector<16x4xf32>
    %204 = vector.broadcast %183 : vector<16x1xf32> to vector<16x4xf32>
    %205 = arith.addf %203, %204 : vector<16x4xf32>
    %cst_82 = arith.constant dense<0.000000e+00> : vector<16xf32>
    %206 = vector.multi_reduction <add>, %205, %cst_82 [1] : vector<16x4xf32> to vector<16xf32>
    %207 = vector.shape_cast %206 : vector<16xf32> to vector<16x1xf32>
    %cst_83 = arith.constant 4.000000e+00 : f32
    %208 = vector.broadcast %cst_83 : f32 to vector<16x1xf32>
    %209 = arith.divf %207, %208 : vector<16x1xf32>
    %210 = vector.broadcast %209 : vector<16x1xf32> to vector<16x4xf32>
    %211 = arith.subf %205, %210 : vector<16x4xf32>
    %212 = arith.mulf %211, %211 : vector<16x4xf32>
    %cst_84 = arith.constant dense<0.000000e+00> : vector<16xf32>
    %213 = vector.multi_reduction <add>, %212, %cst_84 [1] : vector<16x4xf32> to vector<16xf32>
    %214 = vector.shape_cast %213 : vector<16xf32> to vector<16x1xf32>
    %cst_85 = arith.constant 4.000000e+00 : f32
    %215 = vector.broadcast %cst_85 : f32 to vector<16x1xf32>
    %216 = arith.divf %214, %215 : vector<16x1xf32>
    %cst_86 = arith.constant 9.99999974E-6 : f32
    %217 = vector.broadcast %cst_86 : f32 to vector<16x1xf32>
    %218 = arith.addf %216, %217 : vector<16x1xf32>
    %219 = math.rsqrt %218 : vector<16x1xf32>
    %220 = vector.broadcast %219 : vector<16x1xf32> to vector<16x4xf32>
    %221 = arith.mulf %211, %220 : vector<16x4xf32>
    %cst_87 = arith.constant 0.000000e+00 : f32
    %222 = vector.broadcast %cst_87 : f32 to vector<16x4xf32>
    %223 = arith.cmpf oge, %221, %222 : vector<16x4xf32>
    %cst_88 = arith.constant 2.000000e-01 : f32
    %224 = vector.broadcast %cst_88 : f32 to vector<16x4xf32>
    %225 = arith.mulf %224, %221 : vector<16x4xf32>
    %226 = arith.select %223, %221, %225 : vector<16x4xi1>, vector<16x4xf32>
    %c0_89 = arith.constant 0 : index
    %c0_90 = arith.constant 0 : index
    %227 = vector.load %arg12[%c0_89, %c0_90] : memref<16x48xf32, #tpu.memory_space<vmem>>, vector<16x48xf32>
    %c0_91 = arith.constant 0 : index
    %c0_92 = arith.constant 0 : index
    %228 = vector.load %arg13[%c0_91, %c0_92] : memref<16x1xf32, #tpu.memory_space<vmem>>, vector<16x1xf32>
    %229 = vector.extract_strided_slice %226 {offsets = [0, 1], sizes = [16, 1], strides = [1, 1]} : vector<16x4xf32> to vector<16x1xf32>
    %230 = vector.extract_strided_slice %226 {offsets = [0, 2], sizes = [16, 1], strides = [1, 1]} : vector<16x4xf32> to vector<16x1xf32>
    %231 = tpu.concatenate %229, %226, %230 in 1 : vector<16x1xf32>, vector<16x4xf32>, vector<16x1xf32> -> vector<16x6xf32>
    %232 = vector.extract_strided_slice %231 {offsets = [0, 0], sizes = [16, 4], strides = [1, 1]} : vector<16x6xf32> to vector<16x4xf32>
    %233 = vector.extract_strided_slice %231 {offsets = [0, 1], sizes = [16, 4], strides = [1, 1]} : vector<16x6xf32> to vector<16x4xf32>
    %234 = vector.extract_strided_slice %231 {offsets = [0, 2], sizes = [16, 4], strides = [1, 1]} : vector<16x6xf32> to vector<16x4xf32>
    %235 = tpu.concatenate %232, %233, %234 in 0 : vector<16x4xf32>, vector<16x4xf32>, vector<16x4xf32> -> vector<48x4xf32>
    %236 = arith.truncf %227 : vector<16x48xf32> to vector<16x48xbf16>
    %237 = arith.truncf %235 : vector<48x4xf32> to vector<48x4xbf16>
    %238 = arith.extf %236 : vector<16x48xbf16> to vector<16x48xf32>
    %239 = arith.subf %227, %238 : vector<16x48xf32>
    %240 = arith.truncf %239 : vector<16x48xf32> to vector<16x48xbf16>
    %241 = arith.extf %237 : vector<48x4xbf16> to vector<48x4xf32>
    %242 = arith.subf %235, %241 : vector<48x4xf32>
    %243 = arith.truncf %242 : vector<48x4xf32> to vector<48x4xbf16>
    %cst_93 = arith.constant dense<0.000000e+00> : vector<16x4xf32>
    %244 = tpu.matmul %236, %237, %cst_93 {dimension_numbers = #tpu.dot_dimension_numbers<[1], [0], [0], [1], [0, 0, 1, 1], [], []>} : vector<16x48xbf16>, vector<48x4xbf16>, vector<16x4xf32> -> vector<16x4xf32>
    %cst_94 = arith.constant dense<0.000000e+00> : vector<16x4xf32>
    %245 = tpu.matmul %240, %237, %cst_94 {dimension_numbers = #tpu.dot_dimension_numbers<[1], [0], [0], [1], [0, 0, 1, 1], [], []>} : vector<16x48xbf16>, vector<48x4xbf16>, vector<16x4xf32> -> vector<16x4xf32>
    %246 = arith.addf %244, %245 : vector<16x4xf32>
    %cst_95 = arith.constant dense<0.000000e+00> : vector<16x4xf32>
    %247 = tpu.matmul %236, %243, %cst_95 {dimension_numbers = #tpu.dot_dimension_numbers<[1], [0], [0], [1], [0, 0, 1, 1], [], []>} : vector<16x48xbf16>, vector<48x4xbf16>, vector<16x4xf32> -> vector<16x4xf32>
    %248 = arith.addf %246, %247 : vector<16x4xf32>
    %249 = vector.broadcast %228 : vector<16x1xf32> to vector<16x4xf32>
    %250 = arith.addf %248, %249 : vector<16x4xf32>
    %cst_96 = arith.constant dense<0.000000e+00> : vector<16xf32>
    %251 = vector.multi_reduction <add>, %250, %cst_96 [1] : vector<16x4xf32> to vector<16xf32>
    %252 = vector.shape_cast %251 : vector<16xf32> to vector<16x1xf32>
    %cst_97 = arith.constant 4.000000e+00 : f32
    %253 = vector.broadcast %cst_97 : f32 to vector<16x1xf32>
    %254 = arith.divf %252, %253 : vector<16x1xf32>
    %255 = vector.broadcast %254 : vector<16x1xf32> to vector<16x4xf32>
    %256 = arith.subf %250, %255 : vector<16x4xf32>
    %257 = arith.mulf %256, %256 : vector<16x4xf32>
    %cst_98 = arith.constant dense<0.000000e+00> : vector<16xf32>
    %258 = vector.multi_reduction <add>, %257, %cst_98 [1] : vector<16x4xf32> to vector<16xf32>
    %259 = vector.shape_cast %258 : vector<16xf32> to vector<16x1xf32>
    %cst_99 = arith.constant 4.000000e+00 : f32
    %260 = vector.broadcast %cst_99 : f32 to vector<16x1xf32>
    %261 = arith.divf %259, %260 : vector<16x1xf32>
    %cst_100 = arith.constant 9.99999974E-6 : f32
    %262 = vector.broadcast %cst_100 : f32 to vector<16x1xf32>
    %263 = arith.addf %261, %262 : vector<16x1xf32>
    %264 = math.rsqrt %263 : vector<16x1xf32>
    %265 = vector.broadcast %264 : vector<16x1xf32> to vector<16x4xf32>
    %266 = arith.mulf %256, %265 : vector<16x4xf32>
    %267 = arith.addf %266, %181 : vector<16x4xf32>
    %c0_101 = arith.constant 0 : index
    %c0_102 = arith.constant 0 : index
    %c0_103 = arith.constant 0 : index
    %268 = vector.load %arg14[%c0_101, %c0_102, %c0_103] : memref<1x16x4xf32, #tpu.memory_space<vmem>>, vector<1x16x4xf32>
    %269 = vector.shape_cast %268 : vector<1x16x4xf32> to vector<16x4xf32>
    %270 = vector.shape_cast %267 : vector<16x4xf32> to vector<1x16x4xf32>
    tpu.vector_store %arg14[%c0_101, %c0_102, %c0_103], %270 {strides = array<i32>} : memref<1x16x4xf32, #tpu.memory_space<vmem>>, vector<1x16x4xf32>,
    return
  }
  func.func @transform_0(%arg0: i32) -> (i32, i32, i32) {
    %c0_i32 = arith.constant 0 : i32
    %c0_i32_0 = arith.constant 0 : i32
    %c0_i32_1 = arith.constant 0 : i32
    return %arg0, %c0_i32, %c0_i32_0 : i32, i32, i32
  }
  func.func @transform_1(%arg0: i32) -> (i32, i32) {
    %c0_i32 = arith.constant 0 : i32
    %c0_i32_0 = arith.constant 0 : i32
    %c0_i32_1 = arith.constant 0 : i32
    return %c0_i32, %c0_i32_0 : i32, i32
  }
  func.func @transform_2(%arg0: i32) -> (i32, i32) {
    %c0_i32 = arith.constant 0 : i32
    %c0_i32_0 = arith.constant 0 : i32
    %c0_i32_1 = arith.constant 0 : i32
    return %c0_i32, %c0_i32_0 : i32, i32
  }
  func.func @transform_3(%arg0: i32) -> (i32, i32) {
    %c0_i32 = arith.constant 0 : i32
    %c0_i32_0 = arith.constant 0 : i32
    %c0_i32_1 = arith.constant 0 : i32
    return %c0_i32, %c0_i32_0 : i32, i32
  }
  func.func @transform_4(%arg0: i32) -> (i32, i32) {
    %c0_i32 = arith.constant 0 : i32
    %c0_i32_0 = arith.constant 0 : i32
    %c0_i32_1 = arith.constant 0 : i32
    return %c0_i32, %c0_i32_0 : i32, i32
  }
  func.func @transform_5(%arg0: i32) -> (i32, i32) {
    %c0_i32 = arith.constant 0 : i32
    %c0_i32_0 = arith.constant 0 : i32
    %c0_i32_1 = arith.constant 0 : i32
    return %c0_i32, %c0_i32_0 : i32, i32
  }
  func.func @transform_6(%arg0: i32) -> (i32, i32) {
    %c0_i32 = arith.constant 0 : i32
    %c0_i32_0 = arith.constant 0 : i32
    %c0_i32_1 = arith.constant 0 : i32
    return %c0_i32, %c0_i32_0 : i32, i32
  }
  func.func @transform_7(%arg0: i32) -> (i32, i32) {
    %c0_i32 = arith.constant 0 : i32
    %c0_i32_0 = arith.constant 0 : i32
    %c0_i32_1 = arith.constant 0 : i32
    return %c0_i32, %c0_i32_0 : i32, i32
  }
  func.func @transform_8(%arg0: i32) -> (i32, i32) {
    %c0_i32 = arith.constant 0 : i32
    %c0_i32_0 = arith.constant 0 : i32
    %c0_i32_1 = arith.constant 0 : i32
    return %c0_i32, %c0_i32_0 : i32, i32
  }
  func.func @transform_9(%arg0: i32) -> (i32, i32) {
    %c0_i32 = arith.constant 0 : i32
    %c0_i32_0 = arith.constant 0 : i32
    %c0_i32_1 = arith.constant 0 : i32
    return %c0_i32, %c0_i32_0 : i32, i32
  }
  func.func @transform_10(%arg0: i32) -> (i32, i32) {
    %c0_i32 = arith.constant 0 : i32
    %c0_i32_0 = arith.constant 0 : i32
    %c0_i32_1 = arith.constant 0 : i32
    return %c0_i32, %c0_i32_0 : i32, i32
  }
  func.func @transform_11(%arg0: i32) -> (i32, i32) {
    %c0_i32 = arith.constant 0 : i32
    %c0_i32_0 = arith.constant 0 : i32
    %c0_i32_1 = arith.constant 0 : i32
    return %c0_i32, %c0_i32_0 : i32, i32
  }
  func.func @transform_12(%arg0: i32) -> (i32, i32) {
    %c0_i32 = arith.constant 0 : i32
    %c0_i32_0 = arith.constant 0 : i32
    %c0_i32_1 = arith.constant 0 : i32
    return %c0_i32, %c0_i32_0 : i32, i32
  }
  func.func @transform_13(%arg0: i32) -> (i32, i32, i32) {
    %c0_i32 = arith.constant 0 : i32
    %c0_i32_0 = arith.constant 0 : i32
    %c0_i32_1 = arith.constant 0 : i32
    return %arg0, %c0_i32, %c0_i32_0 : i32, i32, i32
  }
}

</mosaic_0001>

<bundles_post_ra>
// kernel: tpu_custom_call.1
= control target key start
LH: loop header
LB: loop body
LE: loop exit
PB: predicated region body
PF: predicated region fallthrough
CT: control target
= control target key end

     0   :  { %s2257_s25 = smov 0   ;;  %s2559_s0 = inlined_call_operand.vmem [shape: f32[2,16,4], index: 0, kind: input, shape index: {}]   ;;  %s2560_s1 = inlined_call_operand.vmem [shape: f32[12,8], index: 1, kind: input, shape index: {}]   ;;  %s2561_s2 = inlined_call_operand.vmem [shape: f32[1,8], index: 2, kind: input, shape index: {}]   ;;  %s2562_s3 = inlined_call_operand.vmem [shape: f32[16,24], index: 3, kind: input, shape index: {}]   ;;  %s2563_s4 = inlined_call_operand.vmem [shape: f32[16,1], index: 4, kind: input, shape index: {}]   ;;  %s2564_s5 = inlined_call_operand.vmem [shape: f32[16,48], index: 5, kind: input, shape index: {}]   ;;  %s2565_s6 = inlined_call_operand.vmem [shape: f32[16,1], index: 6, kind: input, shape index: {}]   ;;  %s2566_s7 = inlined_call_operand.vmem [shape: f32[16,48], index: 7, kind: input, shape index: {}]   ;;  %s2567_s8 = inlined_call_operand.vmem [shape: f32[16,1], index: 8, kind: input, shape index: {}]   ;;  %s2568_s9 = inlined_call_operand.vmem [shape: f32[16,48], index: 9, kind: input, shape index: {}]   ;;  %s2569_s10 = inlined_call_operand.vmem [shape: f32[16,1], index: 10, kind: input, shape index: {}]   ;;  %s2570_s11 = inlined_call_operand.vmem [shape: f32[16,48], index: 11, kind: input, shape index: {}]   ;;  %s2571_s12 = inlined_call_operand.vmem [shape: f32[16,1], index: 12, kind: input, shape index: {}]   ;;  %s2572_s13 = inlined_call_operand.vmem [shape: f32[2,16,4], index: 13, kind: output, shape index: {}]  }
   0x1 LB: > { %s1879_s26 = sadd.s32 4294967295, %s2175_s25   ;;  %p1883_p0 = scmp.ge.s32.totalorder %s2175_s25, 1  ;;  %s2175_s25 = sphi %s2257_s25, %s23_s25  }
   0x2   : > { %p387_p1 = scmp.lt.s32.totalorder %s2175_s25, 3 }
   0x4   : > { %p388_p2 = pnand %p1883_p0, %p387_p1 }
   0x5   : > { %p431_p3 = scmp.lt.s32.totalorder (!%p388_p2), %s1879_s26, 1  ;;  %v444_v0 = vld [vmem:[%s2560_s1] sm:$0xff] (!%p388_p2)  ;;  %v445_v1 = vld [vmem:[%s2560_s1 + $0x8] sm:$0xf] (!%p388_p2)  ;;  %v2177_v2 = vmov (!%p388_p2), 0.0   ;;  %vm447_vm0 = vcmask (!%p388_p2), 31744  }
   0x6   : > { %391 = sbr.rel (%p388_p2) target bundleno = 4256 (0x10a0), region = 72  ;;  %1977 = vmatprep.subr.bf16.mxu1 (!%p388_p2), %v2177_v2  ;;  %v471_v3 = vpack.c.bf16 (!%p388_p2), %v445_v1, %v444_v0  ;;  %1971 = vmatprep.subr.bf16.mxu0 (!%p388_p2), %v2177_v2  ;;  %vm450_vm1 = vcmask (!%p388_p2), 25601   ;;  %vm484_vm2 = vcmask (!%p388_p2), 1045504   ;;  %vm2178_vm3 = vmmov (!%p388_p2), 0   ;;  %s2179_s18 = smov (!%p388_p2), 4  }
   0x7   : > { %1979 = vmatprep.mubr.msk.bf16.mxu1 (!%p388_p2), %vm2178_vm3, %v2177_v2  ;;  %1973 = vmatprep.mubr.msk.bf16.mxu0 (!%p388_p2), %vm2178_vm3, %v2177_v2  ;;  %s2180_s19 = smov (!%p388_p2), 8   ;;  %vm468_vm4 = vcmask (!%p388_p2), 64512   ;;  %vm480_vm5 = vcmask (!%p388_p2), 97280   ;;  %v1891_v33 = vld [vmem:[%s2561_s2] ss:$0 sm:$0xff] (!%p388_p2)  ;;  %vm652_vm7 = vcmask (!%p388_p2), 58369  }
   0x8   : > { %v486_v4 = vsel (!%p388_p2), %vm484_vm2, %v471_v3, 0  ;;  %v475_v7 = vunpack.c.l.bf16 (!%p388_p2), %v471_v3  ;;  %v476_v8 = vunpack.c.h.bf16 (!%p388_p2), %v471_v3  ;;  %vm654_vm8 = vcmask (!%p388_p2), 63494   ;;  %s2181_s22 = smov (!%p388_p2), 16   ;;  %v650_v3 = vld [vmem:[%s2563_s4 + $0x8] sm:$0xff] (!%p388_p2)  ;;  %s2186_s20 = smov (!%p388_p2), 126  }
   0x9   : > { %1978 = vmatpush3.bf16.msra.mxu1 (!%p388_p2), %v486_v4  ;;  %1972 = vmatpush3.bf16.msra.mxu0 (!%p388_p2), %v486_v4  ;;  %v2182_v4 = vmov (!%p388_p2), 0   ;;  %vm668_vm9 = vcmask (!%p388_p2), 130048   ;;  %vm680_vm10 = vcmask (!%p388_p2), 195584   ;;  %vm887_vm13 = vcmask (!%p388_p2), 7168  }
   0xa   : > { %1983 = vmatprep.subr.bf16.mxu0 (!%p388_p2), %v2177_v2  ;;  %1989 = vmatprep.subr.bf16.mxu1 (!%p388_p2), %v2177_v2  ;;  %v477_v10 = vsub.f32 (!%p388_p2), %v444_v0, %v475_v7  ;;  %v478_v11 = vsub.f32 (!%p388_p2), %v445_v1, %v476_v8  ;;  %v649_v1 = vld [vmem:[%s2563_s4] sm:$0xff] (!%p388_p2)  ;;  %vm890_vm14 = vcmask (!%p388_p2), 39936   ;;  %vm931_vm15 = vcmask (!%p388_p2), 392192  }
   0xb   : > { %2145 = vset.pattern.permute.xlu0 (!%p388_p2), %v2182_v4  ;;  %2146 = vset.pattern.permute.xlu1 (!%p388_p2), %v2182_v4 }
   0xc   : > { %v479_v13 = vpack.c.bf16 (!%p388_p2), %v478_v11, %v477_v10 }
   0xd   : > { %s2574_s26 = smov (!%p431_p3, %s1879_s26), 1 }
   0xe   : > { %s1909_s14 = sshll.u32 %s2574_s26, 4  ;;  %v572_v14 = vsel %vm484_vm2, %v479_v13, 0 }
   0xf   : > { %s435_s17 = scalar_lea.vmem %s2559_s0, %s1909_s14  ;;  %s440_s21 = scalar_lea.vmem %s2572_s13, %s1909_s14 }
  0x10   : > { %v442_v5 = vld [vmem:[%s435_s17] sm:$0xff]  ;;  %v443_v6 = vld [vmem:[%s435_s17 + $0x8] sm:$0xff]  ;;  %s2183_s17 = smov 1  }
  0x11   : > { %448 = vst.msk [vmem:[#allocation2 + $0x1] sm:$0xff] %vm447_vm0, %v442_v5  ;;  %449 = vst.msk [vmem:[#allocation2 + $0x9] sm:$0xff] %vm447_vm0, %v443_v6  ;;  %v648_v6 = vld [vmem:[%s2562_s3 + $0x8] sm:$0xff] }
  0x12   : > { %451 = vst.msk [vmem:[#allocation2 - $0x1] sm:$0x2] %vm450_vm1, %v442_v5  ;;  %v647_v5 = vld [vmem:[%s2562_s3] sm:$0xff] }
  0x13   : > { %v670_v8 = vpack.c.bf16 %v648_v6, %v647_v5 }
  0x15   : > { %v673_v13 = vunpack.c.h.bf16 %v670_v8 }
  0x18   : > { %v456_v9 = vld [vmem:[#allocation2 + $0x1] ss:$2 sm:$0xff]  ;;  %v458_v12 = vld [vmem:[#allocation2 + $0x2] ss:$2 sm:$0xff] }
  0x19   : > { %460 = vrot.lane.b32.xlu0 %v456_v9, %s2179_s18  ;;  %v454_v16 = vld [vmem:[#allocation2] ss:$2 sm:$0xff]  ;;  %s2184_s18 = smov 127  }
  0x1d   : > { %464 = vrot.lane.b32.xlu0 %v458_v12, %s2180_s19  ;;  %v672_v12 = vunpack.c.l.bf16 %v670_v8 }
  0x21   : > { %820 = vperm.xlu0 %2145, %v649_v1  }
  0x8b   : > { %v461_v15 = vpop.permute.xlu0 %460 }
  0x8c   : > { %v467_v17 = vsel %vm447_vm0, %v454_v16, %v461_v15 }
  0x8f   : > { %v465_v18 = vpop.permute.xlu0 %464 }
  0x90   : > { %v469_v19 = vsel %vm468_vm4, %v467_v17, %v465_v18  ;;  %v674_v18 = vsub.f32 %v647_v5, %v672_v12 }
  0x91   : > { %v470_v20 = vpack.c.bf16 %v469_v19, %v469_v19 }
  0x93   : > { %v472_v21 = vunpack.c.l.bf16 %v470_v20  ;;  %1980 = vmatmul.mubr.msk.bf16.vlgmr.msra.gmra.mrb[0].mxu1 %vm480_vm5, %v470_v20 }
  0x94   : > { %1991 = vmatprep.mubr.msk.bf16.mxu1 %vm2178_vm3, %v2177_v2 }
  0x95   : > { %v473_v22 = vsub.f32 %v469_v19, %v472_v21  ;;  %v675_v19 = vsub.f32 %v648_v6, %v673_v13 }
  0x97   : > { %v474_v23 = vpack.c.bf16 %v473_v22, %v473_v22  ;;  %v676_v22 = vpack.c.bf16 %v675_v19, %v674_v18 }
  0x99   : > { %1974 = vmatmul.mubr.msk.bf16.vlgmr.msra.gmra.mrb[0].mxu0 %vm480_vm5, %v474_v23 }
  0x9a   : > { %1984 = vmatpush3.bf16.msra.mxu0 %v572_v14  ;;  %1985 = vmatprep.mubr.msk.bf16.mxu0 %vm2178_vm3, %v2177_v2 }
  0x9b   : > { %1995 = vmatprep.subr.bf16.mxu0 %v2177_v2 }
  0xa1   : > { %1986 = vmatmul.mubr.msk.bf16.vlgmr.msra.gmra.mrb[4].mxu0 %vm480_vm5, %v470_v20 }
  0xa2   : > { %1997 = vmatprep.mubr.msk.bf16.mxu0 %vm2178_vm3, %v2177_v2 }
 0x166   : > { %v565_v24 = vpop.f32.mrb[0].mxu1 }
 0x167   : > { %v1981_v25 = vpop.f32.mrb[1].mxu1 }
 0x168   : > { %v568_v26 = vpop.f32.mrb[2].mxu1 }
 0x169   : > { %v1982_v27 = vpop.f32.mrb[3].mxu1 }
 0x16c   : > { %v522_v28 = vpop.f32.mrb[0].mxu0 }
 0x16d   : > { %v566_v29 = vadd.f32 %v565_v24, %v522_v28  ;;  %v1975_v30 = vpop.f32.mrb[1].mxu0 }
 0x16e   : > { %v525_v31 = vpop.f32.mrb[2].mxu0 }
 0x16f   : > { %v1976_v32 = vpop.f32.mrb[3].mxu0 }
 0x174   : > { %v608_v34 = vpop.f32.mrb[4].mxu0 }
 0x175   : > { %v614_v35 = vadd.f32 %v608_v34, %v566_v29  ;;  %v1987_v36 = vpop.f32.mrb[5].mxu0 }
 0x176   : > { %v611_v37 = vpop.f32.mrb[6].mxu0 }
 0x177   : > { %v621_v38 = vadd.f32 %v1891_v33, %v614_v35  ;;  %v1988_v39 = vpop.f32.mrb[7].mxu0  ;;  %v821_v35 = vpop.permute.xlu0 %820 }
 0x179   : > { %v622_v40 = vsel %vm468_vm4, %v621_v38, 0.0 }
 0x17a   : > { %v623_v41 = vrot.slane %v622_v40, 4 }
 0x17c   : > { %v624_v42 = vadd.f32 %v623_v41, %v622_v40 }
 0x17e   : > { %v625_v43 = vrot.slane %v624_v42, 2 }
 0x180   : > { %v626_v44 = vadd.f32 %v625_v43, %v624_v42 }
 0x182   : > { %v627_v45 = vrot.slane %v626_v44, 1 }
 0x184   : > { %v628_v46 = vadd.f32 %v627_v45, %v626_v44 }
 0x186   : > { %v630_v47 = vmul.f32 0.125, %v628_v46 }
 0x188   : > { %v631_v48 = vsub.f32 %v621_v38, %v630_v47 }
 0x18a   : > { %v632_v49 = vmul.f32 %v631_v48, %v631_v48 }
 0x18c   : > { %v633_v50 = vsel %vm468_vm4, %v632_v49, 0.0 }
 0x18d   : > { %v634_v51 = vrot.slane %v633_v50, 4 }
 0x18f   : > { %v635_v52 = vadd.f32 %v634_v51, %v633_v50 }
 0x191   : > { %v636_v53 = vrot.slane %v635_v52, 2 }
 0x193   : > { %v637_v54 = vadd.f32 %v636_v53, %v635_v52 }
 0x195   : > { %v638_v55 = vrot.slane %v637_v54, 1 }
 0x197   : > { %v639_v56 = vadd.f32 %v638_v55, %v637_v54 }
 0x199   : > { %v640_v57 = vmul.f32 0.125, %v639_v56 }
 0x19b   : > { %v641_v58 = vadd.f32 1e-05, %v640_v57 }
 0x19d   : > { %2147 = vrsqrt.f32 %v641_v58 }
 0x1a7   : > { %v2148_v59 = vpop.eup %2147 }
 0x1a8   : > { %v643_v60 = vmul.f32 %v2148_v59, %v631_v48 }
 0x1aa   : > { %vm644_vm6 = vcmp.ge.f32.partialorder %v643_v60, 0.0  ;;  %v645_v61 = vmul.f32 0.2, %v643_v60 }
 0x1ac   : > { %v646_v62 = vsel %vm644_vm6, %v643_v60, %v645_v61 }
 0x1ad   : > { %651 = vst.msk [vmem:[#allocation2 + $0x1] sm:$0xff] %vm468_vm4, %v646_v62 }
 0x1ae   : > { %653 = vst.msk [vmem:[#allocation2 - $0x1] sm:$0x2] %vm652_vm7, %v646_v62 }
 0x1af   : > { %655 = vst.msk [vmem:[#allocation2 + $0x3] sm:$0x40] %vm654_vm8, %v646_v62 }
 0x1b4   : > { %v657_v63 = vld [vmem:[#allocation2 + $0x1] ss:$2 sm:$0xf]  ;;  %v658_v0 = vld [vmem:[#allocation2 + $0x2] ss:$2 sm:$0xf] }
 0x1b5   : > { %660 = vrot.lane.b32.xlu1 %v657_v63, %s2180_s19  ;;  %v656_v9 = vld [vmem:[#allocation2] ss:$2 sm:$0xf]  ;;  %s2185_s19 = smov 3  }
 0x1b9   : > { %664 = vrot.lane.b32.xlu1 %v658_v0, %s2181_s22 }
 0x1bd   : > { %825 = vperm.xlu1 %2146, %v650_v3  }
 0x227   : > { %v661_v7 = vpop.permute.xlu1 %660 }
 0x228   : > { %v667_v10 = vsel %vm468_vm4, %v656_v9, %v661_v7 }
 0x22b   : > { %v665_v11 = vpop.permute.xlu1 %664 }
 0x22c   : > { %v669_v14 = vsel %vm668_vm9, %v667_v10, %v665_v11 }
 0x22d   : > { %v671_v15 = vpack.c.bf16 %v669_v14, %v669_v14 }
 0x22f   : > { %v677_v16 = vunpack.c.l.bf16 %v671_v15  ;;  %v685_v17 = vsel %vm680_vm10, %v671_v15, 0 }
 0x230   : > { %1990 = vmatpush3.bf16.xpose.msra.mxu1 %v685_v17  ;;  %1996 = vmatpush3.bf16.xpose.msra.mxu0 %v685_v17 }
 0x231   : > { %v678_v20 = vsub.f32 %v669_v14, %v677_v16  ;;  %2001 = vmatprep.subr.bf16.mxu1 %v2177_v2  ;;  %2007 = vmatprep.subr.bf16.mxu0 %v2177_v2 }
 0x233   : > { %v679_v21 = vpack.c.bf16 %v678_v20, %v678_v20 }
 0x235   : > { %v773_v23 = vsel %vm680_vm10, %v679_v21, 0 }
 0x237   : > { %1992 = vmatmul.mubr.msk.bf16.vlgmr.msra.gmra.mrb[4].mxu1 %vm680_vm10, %v676_v22  ;;  %1998 = vmatmul.mubr.msk.bf16.vlgmr.msra.gmra.mrb[8].mxu0 %vm680_vm10, %v670_v8  ;;  %v865_v22 = vld [vmem:[%s2565_s6] sm:$0xff] }
 0x238   : > { %2002 = vmatpush3.bf16.xpose.msra.mxu1 %v773_v23  ;;  %2003 = vmatprep.mubr.msk.bf16.mxu1 %vm2178_vm3, %v2177_v2  ;;  %v866_v23 = vld [vmem:[%s2565_s6 + $0x8] sm:$0xff] }
 0x239   : > { %2017 = vmatprep.subr.bf16.mxu1 %v2177_v2  ;;  %2013 = vmatprep.mubr.msk.bf16.mxu0 %vm2178_vm3, %v2177_v2 }
 0x23c   : > { %v826_v39 = vpop.permute.xlu1 %825 }
 0x23f   : > { %2004 = vmatmul.mubr.msk.bf16.vlgmr.msra.gmra.mrb[8].mxu1 %vm680_vm10, %v670_v8 }
 0x240   : > { %2023 = vmatprep.mubr.msk.bf16.mxu1 %vm2178_vm3, %v2177_v2 }
 0x30a   : > { %v721_v24 = vpop.f32.mrb[4].mxu1  ;;  %v765_v25 = vpop.f32.mrb[8].mxu0 }
 0x30b   : > { %v766_v26 = vadd.f32 %v765_v25, %v721_v24  ;;  %v1993_v27 = vpop.f32.mrb[5].mxu1  ;;  %v1999_v28 = vpop.f32.mrb[9].mxu0  ;;  %v863_v25 = vld [vmem:[%s2564_s5] sm:$0xff] }
 0x30c   : > { %v724_v29 = vpop.f32.mrb[6].mxu1  ;;  %v768_v30 = vpop.f32.mrb[10].mxu0 }
 0x30d   : > { %v769_v31 = vadd.f32 %v768_v30, %v724_v29  ;;  %v1994_v32 = vpop.f32.mrb[7].mxu1  ;;  %v2000_v33 = vpop.f32.mrb[11].mxu0 }
 0x312   : > { %v809_v34 = vpop.f32.mrb[8].mxu1 }
 0x313   : > { %v816_v36 = vadd.f32 %v809_v34, %v766_v26  ;;  %v2005_v37 = vpop.f32.mrb[9].mxu1  ;;  %v864_v26 = vld [vmem:[%s2564_s5 + $0x8] sm:$0xff] }
 0x314   : > { %v812_v38 = vpop.f32.mrb[10].mxu1  ;;  %v907_v27 = vpack.c.bf16 %v864_v26, %v863_v25 }
 0x315   : > { %v828_v40 = vadd.f32 %v821_v35, %v816_v36  ;;  %v817_v41 = vadd.f32 %v812_v38, %v769_v31  ;;  %v2006_v42 = vpop.f32.mrb[11].mxu1 }
 0x316   : > { %v911_v28 = vunpack.c.l.bf16 %v907_v27  ;;  %v912_v29 = vunpack.c.h.bf16 %v907_v27 }
 0x317   : > { %v829_v43 = vadd.f32 %v826_v39, %v817_v41  ;;  %v830_v44 = vsel %vm447_vm0, %v828_v40, 0.0 }
 0x318   : > { %831 = vadd.xlane.f32.xlu1 %v830_v44  ;;  %v913_v33 = vsub.f32 %v863_v25, %v911_v28  ;;  %v914_v34 = vsub.f32 %v864_v26, %v912_v29 }
 0x319   : > { %v833_v45 = vsel %vm447_vm0, %v829_v43, 0.0 }
 0x31a   : > { %834 = vadd.xlane.f32.xlu0 %v833_v45 }
 0x3a5   : > { %v832_v46 = vpop.xlane.xlu1 %831 }
 0x3a6   : > { %v837_v47 = vmul.f32 0.25, %v832_v46 }
 0x3a7   : > { %v835_v48 = vpop.xlane.xlu0 %834 }
 0x3a8   : > { %v839_v49 = vsub.f32 %v828_v40, %v837_v47  ;;  %v838_v50 = vmul.f32 0.25, %v835_v48  ;;  %v915_v40 = vpack.c.bf16 %v914_v34, %v913_v33 }
 0x3aa   : > { %v840_v51 = vsub.f32 %v829_v43, %v838_v50  ;;  %v841_v52 = vmul.f32 %v839_v49, %v839_v49 }
 0x3ac   : > { %v843_v53 = vsel %vm447_vm0, %v841_v52, 0.0  ;;  %v842_v54 = vmul.f32 %v840_v51, %v840_v51 }
 0x3ad   : > { %844 = vadd.xlane.f32.xlu0 %v843_v53 }
 0x3ae   : > { %v846_v55 = vsel %vm447_vm0, %v842_v54, 0.0 }
 0x3af   : > { %847 = vadd.xlane.f32.xlu1 %v846_v55 }
 0x43a   : > { %v845_v56 = vpop.xlane.xlu0 %844 }
 0x43b   : > { %v849_v57 = vmul.f32 0.25, %v845_v56 }
 0x43c   : > { %v848_v58 = vpop.xlane.xlu1 %847 }
 0x43d   : > { %v851_v59 = vadd.f32 1e-05, %v849_v57  ;;  %v850_v60 = vmul.f32 0.25, %v848_v58 }
 0x43f   : > { %2149 = vrsqrt.f32 %v851_v59  ;;  %v852_v61 = vadd.f32 1e-05, %v850_v60 }
 0x441   : > { %2151 = vrsqrt.f32 %v852_v61 }
 0x449   : > { %v2150_v62 = vpop.eup %2149 }
 0x44a   : > { %v855_v63 = vmul.f32 %v2150_v62, %v839_v49 }
 0x44b   : > { %v2152_v0 = vpop.eup %2151 }
 0x44c   : > { %vm857_vm11 = vcmp.ge.f32.partialorder %v855_v63, 0.0  ;;  %v859_v1 = vmul.f32 0.2, %v855_v63  ;;  %v856_v3 = vmul.f32 %v2152_v0, %v840_v51 }
 0x44e   : > { %v2339_v4 = vsel %vm857_vm11, %v855_v63, %v859_v1  ;;  %v860_v5 = vmul.f32 0.2, %v856_v3  ;;  %vm858_vm12 = vcmp.ge.f32.partialorder %v856_v3, 0.0 }
 0x44f   : > { %875 = vrot.lane.b32.xlu1 %v2339_v4, %s2183_s17  ;;  %869 = vrot.lane.b32.xlu0 %v2339_v4, %s2184_s18 }
 0x450   : > { %v2345_v6 = vsel %vm858_vm12, %v856_v3, %v860_v5 }
 0x453   : > { %871 = vrot.lane.b32.xlu1 %v2345_v6, %s2184_s18  ;;  %877 = vrot.lane.b32.xlu0 %v2345_v6, %s2183_s17 }
 0x457   : > { %881 = vrot.lane.b32.xlu1 %v2339_v4, %s2185_s19  ;;  %883 = vrot.lane.b32.xlu0 %v2345_v6, %s2185_s19 }
 0x4c1   : > { %v876_v7 = vpop.permute.xlu1 %875  ;;  %v870_v8 = vpop.permute.xlu0 %869 }
 0x4c2   : > { %v888_v11 = vsel %vm887_vm13, %v870_v8, %v876_v7 }
 0x4c5   : > { %v872_v9 = vpop.permute.xlu1 %871  ;;  %v878_v10 = vpop.permute.xlu0 %877 }
 0x4c6   : > { %v889_v12 = vsel %vm887_vm13, %v872_v9, %v878_v10 }
 0x4c9   : > { %v882_v13 = vpop.permute.xlu1 %881  ;;  %v884_v14 = vpop.permute.xlu0 %883 }
 0x4ca   : > { %v891_v15 = vsel %vm890_vm14, %v888_v11, %v882_v13  ;;  %v892_v16 = vsel %vm890_vm14, %v889_v12, %v884_v14 }
 0x4cb   : > { %v908_v17 = vpack.c.bf16 %v892_v16, %v891_v15  ;;  %895 = vrot.lane.b32.xlu1 %v891_v15, %s2184_s18  ;;  %897 = vrot.lane.b32.xlu0 %v892_v16, %s2184_s18 }
 0x4cd   : > { %v917_v18 = vunpack.c.h.bf16 %v908_v17  ;;  %2008 = vmatpush3.bf16.msra.mxu0 %v908_v17  ;;  %2018 = vmatpush3.bf16.msra.mxu1 %v908_v17  ;;  %v916_v19 = vunpack.c.l.bf16 %v908_v17 }
 0x4ce   : > { %2009 = vmatprep.subr.bf16.mxu0 %v2177_v2  ;;  %2019 = vmatprep.subr.bf16.mxu1 %v2177_v2 }
 0x4cf   : > { %v923_v20 = vsub.f32 %v892_v16, %v917_v18  ;;  %901 = vrot.lane.b32.xlu1 %v891_v15, %s2186_s20  ;;  %903 = vrot.lane.b32.xlu0 %v892_v16, %s2186_s20  ;;  %v922_v21 = vsub.f32 %v891_v15, %v916_v19 }
 0x4d1   : > { %v928_v24 = vpack.c.bf16 %v923_v20, %v922_v21 }
 0x4d3   : > { %1065 = vperm.xlu1 %2146, %v865_v22   ;;  %1070 = vperm.xlu0 %2145, %v866_v23  }
 0x53d   : > { %v896_v30 = vpop.permute.xlu1 %895  ;;  %v898_v31 = vpop.permute.xlu0 %897 }
 0x53e   : > { %v909_v32 = vpack.c.bf16 %v898_v31, %v896_v30 }
 0x540   : > { %2010 = vmatpush3.bf16.msra.mxu0 %v909_v32  ;;  %2020 = vmatpush3.bf16.msra.mxu1 %v909_v32  ;;  %v918_v37 = vunpack.c.l.bf16 %v909_v32  ;;  %v919_v38 = vunpack.c.h.bf16 %v909_v32 }
 0x541   : > { %v902_v35 = vpop.permute.xlu1 %901  ;;  %v904_v36 = vpop.permute.xlu0 %903  ;;  %2011 = vmatprep.subr.bf16.mxu0 %v2177_v2  ;;  %2021 = vmatprep.subr.bf16.mxu1 %v2177_v2 }
 0x542   : > { %v910_v39 = vpack.c.bf16 %v904_v36, %v902_v35  ;;  %v924_v41 = vsub.f32 %v896_v30, %v918_v37  ;;  %v925_v42 = vsub.f32 %v898_v31, %v919_v38 }
 0x544   : > { %2012 = vmatpush3.bf16.msra.mxu0 %v910_v39  ;;  %2022 = vmatpush3.bf16.msra.mxu1 %v910_v39  ;;  %v920_v43 = vunpack.c.l.bf16 %v910_v39  ;;  %v921_v44 = vunpack.c.h.bf16 %v910_v39  ;;  %v929_v45 = vpack.c.bf16 %v925_v42, %v924_v41 }
 0x545   : > { %2027 = vmatprep.subr.bf16.mxu0 %v2177_v2  ;;  %2037 = vmatprep.subr.bf16.mxu1 %v2177_v2 }
 0x546   : > { %v926_v46 = vsub.f32 %v902_v35, %v920_v43  ;;  %v927_v47 = vsub.f32 %v904_v36, %v921_v44 }
 0x547   : > { %2014 = vmatmul.mubr.msk.bf16.vlgmr.msra.gmra.mrb[12].mxu0 %vm931_vm15, %v915_v40  ;;  %2024 = vmatmul.mubr.msk.bf16.vlgmr.msra.gmra.mrb[12].mxu1 %vm931_vm15, %v907_v27 }
 0x548   : > { %2028 = vmatpush3.bf16.msra.mxu0 %v928_v24  ;;  %2033 = vmatprep.mubr.msk.bf16.mxu0 %vm2178_vm3, %v2177_v2  ;;  %v930_v48 = vpack.c.bf16 %v927_v47, %v926_v46 }
 0x549   : > { %2029 = vmatprep.subr.bf16.mxu0 %v2177_v2  ;;  %2043 = vmatprep.mubr.msk.bf16.mxu1 %vm2178_vm3, %v2177_v2 }
 0x54c   : > { %2030 = vmatpush3.bf16.msra.mxu0 %v929_v45 }
 0x54d   : > { %2031 = vmatprep.subr.bf16.mxu0 %v2177_v2 }
 0x550   : > { %2032 = vmatpush3.bf16.msra.mxu0 %v930_v48 }
 0x551   : > { %2047 = vmatprep.subr.bf16.mxu0 %v2177_v2 }
 0x552   : > { %v1066_v62 = vpop.permute.xlu1 %1065  ;;  %v1071_v5 = vpop.permute.xlu0 %1070 }
 0x553   : > { %2034 = vmatmul.mubr.msk.bf16.vlgmr.msra.gmra.mrb[16].mxu0 %vm931_vm15, %v907_v27 }
 0x554   : > { %2053 = vmatprep.mubr.msk.bf16.mxu0 %vm2178_vm3, %v2177_v2 }
 0x61a   : > { %v969_v49 = vpop.f32.mrb[12].mxu0  ;;  %v1013_v50 = vpop.f32.mrb[12].mxu1 }
 0x61b   : > { %v1014_v51 = vadd.f32 %v1013_v50, %v969_v49  ;;  %v2015_v52 = vpop.f32.mrb[13].mxu0  ;;  %v2025_v53 = vpop.f32.mrb[13].mxu1  ;;  %v1109_v49 = vld [vmem:[%s2567_s8] sm:$0xff]  ;;  %v1110_v50 = vld [vmem:[%s2567_s8 + $0x8] sm:$0xff] }
 0x61c   : > { %v972_v54 = vpop.f32.mrb[14].mxu0  ;;  %v1016_v55 = vpop.f32.mrb[14].mxu1  ;;  %v1107_v52 = vld [vmem:[%s2566_s7] sm:$0xff]  ;;  %v1108_v53 = vld [vmem:[%s2566_s7 + $0x8] sm:$0xff] }
 0x61d   : > { %v1017_v56 = vadd.f32 %v1016_v55, %v972_v54  ;;  %v2016_v57 = vpop.f32.mrb[15].mxu0  ;;  %v2026_v58 = vpop.f32.mrb[15].mxu1  ;;  %v1149_v54 = vpack.c.bf16 %v1108_v53, %v1107_v52 }
 0x61f   : > { %v1153_v55 = vunpack.c.l.bf16 %v1149_v54 }
 0x626   : > { %v1054_v59 = vpop.f32.mrb[16].mxu0 }
 0x627   : > { %v1061_v60 = vadd.f32 %v1054_v59, %v1014_v51  ;;  %v2035_v61 = vpop.f32.mrb[17].mxu0 }
 0x628   : > { %v1057_v63 = vpop.f32.mrb[18].mxu0 }
 0x629   : > { %v1062_v0 = vadd.f32 %v1057_v63, %v1017_v56  ;;  %v2036_v1 = vpop.f32.mrb[19].mxu0  ;;  %v1073_v3 = vadd.f32 %v1066_v62, %v1061_v60  ;;  %v1154_v56 = vunpack.c.h.bf16 %v1149_v54  ;;  %v1155_v60 = vsub.f32 %v1107_v52, %v1153_v55 }
 0x62b   : > { %v1075_v7 = vsel %vm447_vm0, %v1073_v3, 0.0  ;;  %v1074_v8 = vadd.f32 %v1071_v5, %v1062_v0  ;;  %v1156_v61 = vsub.f32 %v1108_v53, %v1154_v56 }
 0x62c   : > { %1076 = vadd.xlane.f32.xlu1 %v1075_v7 }
 0x62d   : > { %v1078_v9 = vsel %vm447_vm0, %v1074_v8, 0.0  ;;  %v1157_v5 = vpack.c.bf16 %v1156_v61, %v1155_v60 }
 0x62e   : > { %1079 = vadd.xlane.f32.xlu0 %v1078_v9 }
 0x6b9   : > { %v1077_v10 = vpop.xlane.xlu1 %1076 }
 0x6ba   : > { %v1081_v11 = vmul.f32 0.25, %v1077_v10 }
 0x6bb   : > { %v1080_v12 = vpop.xlane.xlu0 %1079 }
 0x6bc   : > { %v1083_v13 = vsub.f32 %v1073_v3, %v1081_v11  ;;  %v1082_v14 = vmul.f32 0.25, %v1080_v12 }
 0x6be   : > { %v1084_v15 = vsub.f32 %v1074_v8, %v1082_v14  ;;  %v1085_v16 = vmul.f32 %v1083_v13, %v1083_v13 }
 0x6c0   : > { %v1087_v17 = vsel %vm447_vm0, %v1085_v16, 0.0  ;;  %v1086_v18 = vmul.f32 %v1084_v15, %v1084_v15 }
 0x6c1   : > { %1088 = vadd.xlane.f32.xlu0 %v1087_v17 }
 0x6c2   : > { %v1090_v19 = vsel %vm447_vm0, %v1086_v18, 0.0 }
 0x6c3   : > { %1091 = vadd.xlane.f32.xlu1 %v1090_v19 }
 0x74e   : > { %v1089_v20 = vpop.xlane.xlu0 %1088 }
 0x74f   : > { %v1093_v21 = vmul.f32 0.25, %v1089_v20 }
 0x750   : > { %v1092_v22 = vpop.xlane.xlu1 %1091 }
 0x751   : > { %v1095_v23 = vadd.f32 1e-05, %v1093_v21  ;;  %v1094_v24 = vmul.f32 0.25, %v1092_v22 }
 0x753   : > { %2153 = vrsqrt.f32 %v1095_v23  ;;  %v1096_v25 = vadd.f32 1e-05, %v1094_v24 }
 0x755   : > { %2155 = vrsqrt.f32 %v1096_v25 }
 0x75d   : > { %v2154_v26 = vpop.eup %2153 }
 0x75e   : > { %v1099_v27 = vmul.f32 %v2154_v26, %v1083_v13 }
 0x75f   : > { %v2156_v28 = vpop.eup %2155 }
 0x760   : > { %vm1101_vm1 = vcmp.ge.f32.partialorder %v1099_v27, 0.0  ;;  %v1103_v29 = vmul.f32 0.2, %v1099_v27  ;;  %v1100_v30 = vmul.f32 %v2156_v28, %v1084_v15 }
 0x762   : > { %v1105_v31 = vsel %vm1101_vm1, %v1099_v27, %v1103_v29  ;;  %v1104_v32 = vmul.f32 0.2, %v1100_v30  ;;  %vm1102_vm2 = vcmp.ge.f32.partialorder %v1100_v30, 0.0 }
 0x763   : > { %1119 = vrot.lane.b32.xlu1 %v1105_v31, %s2183_s17  ;;  %1113 = vrot.lane.b32.xlu0 %v1105_v31, %s2184_s18 }
 0x764   : > { %v1106_v33 = vsel %vm1102_vm2, %v1100_v30, %v1104_v32 }
 0x767   : > { %1115 = vrot.lane.b32.xlu1 %v1106_v33, %s2184_s18  ;;  %1121 = vrot.lane.b32.xlu0 %v1106_v33, %s2183_s17 }
 0x76b   : > { %1125 = vrot.lane.b32.xlu1 %v1105_v31, %s2185_s19  ;;  %1127 = vrot.lane.b32.xlu0 %v1106_v33, %s2185_s19 }
 0x7d5   : > { %v1120_v34 = vpop.permute.xlu1 %1119  ;;  %v1114_v35 = vpop.permute.xlu0 %1113 }
 0x7d6   : > { %v1131_v38 = vsel %vm887_vm13, %v1114_v35, %v1120_v34 }
 0x7d9   : > { %v1116_v36 = vpop.permute.xlu1 %1115  ;;  %v1122_v37 = vpop.permute.xlu0 %1121 }
 0x7da   : > { %v1132_v39 = vsel %vm887_vm13, %v1116_v36, %v1122_v37 }
 0x7dd   : > { %v1126_v40 = vpop.permute.xlu1 %1125  ;;  %v1128_v41 = vpop.permute.xlu0 %1127 }
 0x7de   : > { %v1133_v42 = vsel %vm890_vm14, %v1131_v38, %v1126_v40  ;;  %v1134_v43 = vsel %vm890_vm14, %v1132_v39, %v1128_v41 }
 0x7df   : > { %v1150_v44 = vpack.c.bf16 %v1134_v43, %v1133_v42  ;;  %1137 = vrot.lane.b32.xlu1 %v1133_v42, %s2184_s18  ;;  %1139 = vrot.lane.b32.xlu0 %v1134_v43, %s2184_s18 }
 0x7e1   : > { %v1159_v45 = vunpack.c.h.bf16 %v1150_v44  ;;  %2038 = vmatpush3.bf16.msra.mxu1 %v1150_v44  ;;  %2048 = vmatpush3.bf16.msra.mxu0 %v1150_v44  ;;  %v1158_v46 = vunpack.c.l.bf16 %v1150_v44 }
 0x7e2   : > { %2039 = vmatprep.subr.bf16.mxu1 %v2177_v2  ;;  %2049 = vmatprep.subr.bf16.mxu0 %v2177_v2 }
 0x7e3   : > { %v1165_v47 = vsub.f32 %v1134_v43, %v1159_v45  ;;  %1143 = vrot.lane.b32.xlu1 %v1133_v42, %s2186_s20  ;;  %1145 = vrot.lane.b32.xlu0 %v1134_v43, %s2186_s20  ;;  %v1164_v48 = vsub.f32 %v1133_v42, %v1158_v46 }
 0x7e5   : > { %v1170_v51 = vpack.c.bf16 %v1165_v47, %v1164_v48 }
 0x7e7   : > { %1306 = vperm.xlu1 %2146, %v1109_v49   ;;  %1311 = vperm.xlu0 %2145, %v1110_v50  }
 0x851   : > { %v1138_v57 = vpop.permute.xlu1 %1137  ;;  %v1140_v58 = vpop.permute.xlu0 %1139 }
 0x852   : > { %v1151_v59 = vpack.c.bf16 %v1140_v58, %v1138_v57 }
 0x854   : > { %2040 = vmatpush3.bf16.msra.mxu1 %v1151_v59  ;;  %2050 = vmatpush3.bf16.msra.mxu0 %v1151_v59  ;;  %v1160_v0 = vunpack.c.l.bf16 %v1151_v59  ;;  %v1161_v1 = vunpack.c.h.bf16 %v1151_v59 }
 0x855   : > { %v1144_v62 = vpop.permute.xlu1 %1143  ;;  %v1146_v63 = vpop.permute.xlu0 %1145  ;;  %2041 = vmatprep.subr.bf16.mxu1 %v2177_v2  ;;  %2051 = vmatprep.subr.bf16.mxu0 %v2177_v2 }
 0x856   : > { %v1152_v3 = vpack.c.bf16 %v1146_v63, %v1144_v62  ;;  %v1166_v7 = vsub.f32 %v1138_v57, %v1160_v0  ;;  %v1167_v8 = vsub.f32 %v1140_v58, %v1161_v1 }
 0x858   : > { %2042 = vmatpush3.bf16.msra.mxu1 %v1152_v3  ;;  %2052 = vmatpush3.bf16.msra.mxu0 %v1152_v3  ;;  %v1162_v9 = vunpack.c.l.bf16 %v1152_v3  ;;  %v1163_v10 = vunpack.c.h.bf16 %v1152_v3  ;;  %v1171_v11 = vpack.c.bf16 %v1167_v8, %v1166_v7 }
 0x859   : > { %2057 = vmatprep.subr.bf16.mxu1 %v2177_v2  ;;  %2067 = vmatprep.subr.bf16.mxu0 %v2177_v2 }
 0x85a   : > { %v1168_v12 = vsub.f32 %v1144_v62, %v1162_v9  ;;  %v1169_v13 = vsub.f32 %v1146_v63, %v1163_v10 }
 0x85b   : > { %2044 = vmatmul.mubr.msk.bf16.vlgmr.msra.gmra.mrb[16].mxu1 %vm931_vm15, %v1157_v5  ;;  %2054 = vmatmul.mubr.msk.bf16.vlgmr.msra.gmra.mrb[20].mxu0 %vm931_vm15, %v1149_v54 }
 0x85c   : > { %2058 = vmatpush3.bf16.msra.mxu1 %v1170_v51  ;;  %2063 = vmatprep.mubr.msk.bf16.mxu1 %vm2178_vm3, %v2177_v2  ;;  %v1172_v14 = vpack.c.bf16 %v1169_v13, %v1168_v12  ;;  %v1347_v12 = vld [vmem:[%s2569_s10 + $0x8] sm:$0xff] }
 0x85d   : > { %2059 = vmatprep.subr.bf16.mxu1 %v2177_v2  ;;  %2073 = vmatprep.mubr.msk.bf16.mxu0 %vm2178_vm3, %v2177_v2 }
 0x860   : > { %2060 = vmatpush3.bf16.msra.mxu1 %v1171_v11  ;;  %v1346_v11 = vld [vmem:[%s2569_s10] sm:$0xff] }
 0x861   : > { %2061 = vmatprep.subr.bf16.mxu1 %v2177_v2 }
 0x864   : > { %2062 = vmatpush3.bf16.msra.mxu1 %v1172_v14  ;;  %v1344_v14 = vld [vmem:[%s2568_s9] sm:$0xff] }
 0x865   : > { %2077 = vmatprep.subr.bf16.mxu1 %v2177_v2 }
 0x866   : > { %v1307_v28 = vpop.permute.xlu1 %1306  ;;  %v1312_v33 = vpop.permute.xlu0 %1311 }
 0x867   : > { %2064 = vmatmul.mubr.msk.bf16.vlgmr.msra.gmra.mrb[20].mxu1 %vm931_vm15, %v1149_v54 }
 0x868   : > { %2083 = vmatprep.mubr.msk.bf16.mxu1 %vm2178_vm3, %v2177_v2 }
 0x92e   : > { %v1210_v15 = vpop.f32.mrb[16].mxu1  ;;  %v1254_v16 = vpop.f32.mrb[20].mxu0 }
 0x92f   : > { %v1255_v17 = vadd.f32 %v1254_v16, %v1210_v15  ;;  %v2045_v18 = vpop.f32.mrb[17].mxu1  ;;  %v2055_v19 = vpop.f32.mrb[21].mxu0  ;;  %v1345_v15 = vld [vmem:[%s2568_s9 + $0x8] sm:$0xff] }
 0x930   : > { %v1213_v20 = vpop.f32.mrb[18].mxu1  ;;  %v1257_v21 = vpop.f32.mrb[22].mxu0  ;;  %v1386_v16 = vpack.c.bf16 %v1345_v15, %v1344_v14 }
 0x931   : > { %v1258_v22 = vadd.f32 %v1257_v21, %v1213_v20  ;;  %v2046_v23 = vpop.f32.mrb[19].mxu1  ;;  %v2056_v24 = vpop.f32.mrb[23].mxu0 }
 0x932   : > { %v1391_v18 = vunpack.c.h.bf16 %v1386_v16 }
 0x934   : > { %v1393_v23 = vsub.f32 %v1345_v15, %v1391_v18 }
 0x93a   : > { %v1295_v25 = vpop.f32.mrb[20].mxu1 }
 0x93b   : > { %v1302_v26 = vadd.f32 %v1295_v25, %v1255_v17  ;;  %v2065_v27 = vpop.f32.mrb[21].mxu1  ;;  %v1390_v17 = vunpack.c.l.bf16 %v1386_v16 }
 0x93c   : > { %v1298_v29 = vpop.f32.mrb[22].mxu1 }
 0x93d   : > { %v1303_v30 = vadd.f32 %v1298_v29, %v1258_v22  ;;  %v2066_v31 = vpop.f32.mrb[23].mxu1  ;;  %v1314_v32 = vadd.f32 %v1307_v28, %v1302_v26  ;;  %v1392_v22 = vsub.f32 %v1344_v14, %v1390_v17 }
 0x93f   : > { %v1316_v34 = vsel %vm447_vm0, %v1314_v32, 0.0  ;;  %v1315_v35 = vadd.f32 %v1312_v33, %v1303_v30  ;;  %v1394_v29 = vpack.c.bf16 %v1393_v23, %v1392_v22 }
 0x940   : > { %1317 = vadd.xlane.f32.xlu1 %v1316_v34 }
 0x941   : > { %v1319_v36 = vsel %vm447_vm0, %v1315_v35, 0.0 }
 0x942   : > { %1320 = vadd.xlane.f32.xlu0 %v1319_v36 }
 0x9cd   : > { %v1318_v37 = vpop.xlane.xlu1 %1317 }
 0x9ce   : > { %v1322_v38 = vmul.f32 0.25, %v1318_v37 }
 0x9cf   : > { %v1321_v39 = vpop.xlane.xlu0 %1320 }
 0x9d0   : > { %v1324_v40 = vsub.f32 %v1314_v32, %v1322_v38  ;;  %v1323_v41 = vmul.f32 0.25, %v1321_v39 }
 0x9d2   : > { %v1325_v42 = vsub.f32 %v1315_v35, %v1323_v41  ;;  %v1326_v43 = vmul.f32 %v1324_v40, %v1324_v40 }
 0x9d4   : > { %v1328_v44 = vsel %vm447_vm0, %v1326_v43, 0.0  ;;  %v1327_v45 = vmul.f32 %v1325_v42, %v1325_v42 }
 0x9d5   : > { %1329 = vadd.xlane.f32.xlu0 %v1328_v44 }
 0x9d6   : > { %v1331_v46 = vsel %vm447_vm0, %v1327_v45, 0.0 }
 0x9d7   : > { %1332 = vadd.xlane.f32.xlu1 %v1331_v46 }
 0xa62   : > { %v1330_v47 = vpop.xlane.xlu0 %1329 }
 0xa63   : > { %v1334_v48 = vmul.f32 0.25, %v1330_v47 }
 0xa64   : > { %v1333_v49 = vpop.xlane.xlu1 %1332 }
 0xa65   : > { %v1336_v50 = vadd.f32 1e-05, %v1334_v48  ;;  %v1335_v51 = vmul.f32 0.25, %v1333_v49 }
 0xa67   : > { %2157 = vrsqrt.f32 %v1336_v50  ;;  %v1337_v52 = vadd.f32 1e-05, %v1335_v51 }
 0xa69   : > { %2159 = vrsqrt.f32 %v1337_v52 }
 0xa71   : > { %v2158_v53 = vpop.eup %2157 }
 0xa72   : > { %v1340_v54 = vmul.f32 %v2158_v53, %v1324_v40 }
 0xa73   : > { %v2160_v55 = vpop.eup %2159 }
 0xa74   : > { %v2446_v56 = vadd.f32 %v1340_v54, %v2339_v4  ;;  %v1341_v57 = vmul.f32 %v2160_v55, %v1325_v42 }
 0xa76   : > { %1356 = vrot.lane.b32.xlu1 %v2446_v56, %s2183_s17  ;;  %1350 = vrot.lane.b32.xlu0 %v2446_v56, %s2184_s18  ;;  %v2453_v58 = vadd.f32 %v1341_v57, %v2345_v6 }
 0xa7a   : > { %1352 = vrot.lane.b32.xlu1 %v2453_v58, %s2184_s18  ;;  %1358 = vrot.lane.b32.xlu0 %v2453_v58, %s2183_s17 }
 0xa7e   : > { %1362 = vrot.lane.b32.xlu1 %v2446_v56, %s2185_s19  ;;  %1364 = vrot.lane.b32.xlu0 %v2453_v58, %s2185_s19 }
 0xae8   : > { %v1357_v4 = vpop.permute.xlu1 %1356  ;;  %v1351_v59 = vpop.permute.xlu0 %1350 }
 0xae9   : > { %v1368_v62 = vsel %vm887_vm13, %v1351_v59, %v1357_v4 }
 0xaec   : > { %v1353_v60 = vpop.permute.xlu1 %1352  ;;  %v1359_v61 = vpop.permute.xlu0 %1358 }
 0xaed   : > { %v1369_v6 = vsel %vm887_vm13, %v1353_v60, %v1359_v61 }
 0xaf0   : > { %v1363_v63 = vpop.permute.xlu1 %1362  ;;  %v1365_v0 = vpop.permute.xlu0 %1364 }
 0xaf1   : > { %v1370_v1 = vsel %vm890_vm14, %v1368_v62, %v1363_v63  ;;  %v1371_v3 = vsel %vm890_vm14, %v1369_v6, %v1365_v0 }
 0xaf2   : > { %v1387_v5 = vpack.c.bf16 %v1371_v3, %v1370_v1  ;;  %1374 = vrot.lane.b32.xlu1 %v1370_v1, %s2184_s18  ;;  %1376 = vrot.lane.b32.xlu0 %v1371_v3, %s2184_s18 }
 0xaf4   : > { %v1396_v7 = vunpack.c.h.bf16 %v1387_v5  ;;  %2068 = vmatpush3.bf16.msra.mxu0 %v1387_v5  ;;  %2078 = vmatpush3.bf16.msra.mxu1 %v1387_v5  ;;  %v1395_v8 = vunpack.c.l.bf16 %v1387_v5 }
 0xaf5   : > { %2069 = vmatprep.subr.bf16.mxu0 %v2177_v2  ;;  %2079 = vmatprep.subr.bf16.mxu1 %v2177_v2 }
 0xaf6   : > { %v1402_v9 = vsub.f32 %v1371_v3, %v1396_v7  ;;  %1380 = vrot.lane.b32.xlu1 %v1370_v1, %s2186_s20  ;;  %1382 = vrot.lane.b32.xlu0 %v1371_v3, %s2186_s20  ;;  %v1401_v10 = vsub.f32 %v1370_v1, %v1395_v8 }
 0xaf8   : > { %v1407_v13 = vpack.c.bf16 %v1402_v9, %v1401_v10 }
 0xafa   : > { %1543 = vperm.xlu1 %2146, %v1346_v11   ;;  %1548 = vperm.xlu0 %2145, %v1347_v12  }
 0xb64   : > { %v1375_v19 = vpop.permute.xlu1 %1374  ;;  %v1377_v20 = vpop.permute.xlu0 %1376 }
 0xb65   : > { %v1388_v21 = vpack.c.bf16 %v1377_v20, %v1375_v19 }
 0xb67   : > { %2070 = vmatpush3.bf16.msra.mxu0 %v1388_v21  ;;  %2080 = vmatpush3.bf16.msra.mxu1 %v1388_v21  ;;  %v1397_v26 = vunpack.c.l.bf16 %v1388_v21  ;;  %v1398_v27 = vunpack.c.h.bf16 %v1388_v21 }
 0xb68   : > { %v1381_v24 = vpop.permute.xlu1 %1380  ;;  %v1383_v25 = vpop.permute.xlu0 %1382  ;;  %2071 = vmatprep.subr.bf16.mxu0 %v2177_v2  ;;  %2081 = vmatprep.subr.bf16.mxu1 %v2177_v2 }
 0xb69   : > { %v1389_v28 = vpack.c.bf16 %v1383_v25, %v1381_v24  ;;  %v1403_v30 = vsub.f32 %v1375_v19, %v1397_v26  ;;  %v1404_v31 = vsub.f32 %v1377_v20, %v1398_v27 }
 0xb6b   : > { %2072 = vmatpush3.bf16.msra.mxu0 %v1389_v28  ;;  %2082 = vmatpush3.bf16.msra.mxu1 %v1389_v28  ;;  %v1399_v32 = vunpack.c.l.bf16 %v1389_v28  ;;  %v1400_v33 = vunpack.c.h.bf16 %v1389_v28  ;;  %v1408_v34 = vpack.c.bf16 %v1404_v31, %v1403_v30 }
 0xb6c   : > { %2087 = vmatprep.subr.bf16.mxu0 %v2177_v2  ;;  %2097 = vmatprep.subr.bf16.mxu1 %v2177_v2 }
 0xb6d   : > { %v1405_v35 = vsub.f32 %v1381_v24, %v1399_v32  ;;  %v1406_v36 = vsub.f32 %v1383_v25, %v1400_v33 }
 0xb6e   : > { %2074 = vmatmul.mubr.msk.bf16.vlgmr.msra.gmra.mrb[24].mxu0 %vm931_vm15, %v1394_v29  ;;  %2084 = vmatmul.mubr.msk.bf16.vlgmr.msra.gmra.mrb[24].mxu1 %vm931_vm15, %v1386_v16 }
 0xb6f   : > { %2088 = vmatpush3.bf16.msra.mxu0 %v1407_v13  ;;  %2093 = vmatprep.mubr.msk.bf16.mxu0 %vm2178_vm3, %v2177_v2  ;;  %v1409_v37 = vpack.c.bf16 %v1406_v36, %v1405_v35 }
 0xb70   : > { %2089 = vmatprep.subr.bf16.mxu0 %v2177_v2  ;;  %2103 = vmatprep.mubr.msk.bf16.mxu1 %vm2178_vm3, %v2177_v2 }
 0xb73   : > { %2090 = vmatpush3.bf16.msra.mxu0 %v1408_v34 }
 0xb74   : > { %2091 = vmatprep.subr.bf16.mxu0 %v2177_v2 }
 0xb77   : > { %2092 = vmatpush3.bf16.msra.mxu0 %v1409_v37 }
 0xb78   : > { %2107 = vmatprep.subr.bf16.mxu0 %v2177_v2 }
 0xb79   : > { %v1544_v51 = vpop.permute.xlu1 %1543  ;;  %v1549_v57 = vpop.permute.xlu0 %1548 }
 0xb7a   : > { %2094 = vmatmul.mubr.msk.bf16.vlgmr.msra.gmra.mrb[28].mxu0 %vm931_vm15, %v1386_v16 }
 0xb7b   : > { %2113 = vmatprep.mubr.msk.bf16.mxu0 %vm2178_vm3, %v2177_v2 }
 0xc41   : > { %v1447_v38 = vpop.f32.mrb[24].mxu0  ;;  %v1491_v39 = vpop.f32.mrb[24].mxu1 }
 0xc42   : > { %v1492_v40 = vadd.f32 %v1491_v39, %v1447_v38  ;;  %v2075_v41 = vpop.f32.mrb[25].mxu0  ;;  %v2085_v42 = vpop.f32.mrb[25].mxu1  ;;  %v1587_v38 = vld [vmem:[%s2571_s12] sm:$0xff]  ;;  %v1588_v39 = vld [vmem:[%s2571_s12 + $0x8] sm:$0xff] }
 0xc43   : > { %v1450_v43 = vpop.f32.mrb[26].mxu0  ;;  %v1494_v44 = vpop.f32.mrb[26].mxu1  ;;  %v1585_v41 = vld [vmem:[%s2570_s11] sm:$0xff]  ;;  %v1586_v42 = vld [vmem:[%s2570_s11 + $0x8] sm:$0xff] }
 0xc44   : > { %v1495_v45 = vadd.f32 %v1494_v44, %v1450_v43  ;;  %v2076_v46 = vpop.f32.mrb[27].mxu0  ;;  %v2086_v47 = vpop.f32.mrb[27].mxu1  ;;  %v1627_v43 = vpack.c.bf16 %v1586_v42, %v1585_v41 }
 0xc46   : > { %v1631_v44 = vunpack.c.l.bf16 %v1627_v43 }
 0xc4d   : > { %v1532_v48 = vpop.f32.mrb[28].mxu0 }
 0xc4e   : > { %v1539_v49 = vadd.f32 %v1532_v48, %v1492_v40  ;;  %v2095_v50 = vpop.f32.mrb[29].mxu0 }
 0xc4f   : > { %v1535_v52 = vpop.f32.mrb[30].mxu0 }
 0xc50   : > { %v1540_v53 = vadd.f32 %v1535_v52, %v1495_v45  ;;  %v2096_v54 = vpop.f32.mrb[31].mxu0  ;;  %v1551_v55 = vadd.f32 %v1544_v51, %v1539_v49  ;;  %v1632_v45 = vunpack.c.h.bf16 %v1627_v43  ;;  %v1633_v49 = vsub.f32 %v1585_v41, %v1631_v44 }
 0xc52   : > { %v1553_v4 = vsel %vm447_vm0, %v1551_v55, 0.0  ;;  %v1552_v59 = vadd.f32 %v1549_v57, %v1540_v53  ;;  %v1634_v50 = vsub.f32 %v1586_v42, %v1632_v45 }
 0xc53   : > { %1554 = vadd.xlane.f32.xlu1 %v1553_v4 }
 0xc54   : > { %v1556_v60 = vsel %vm447_vm0, %v1552_v59, 0.0  ;;  %v1635_v57 = vpack.c.bf16 %v1634_v50, %v1633_v49 }
 0xc55   : > { %1557 = vadd.xlane.f32.xlu0 %v1556_v60 }
 0xce0   : > { %v1555_v61 = vpop.xlane.xlu1 %1554 }
 0xce1   : > { %v1559_v62 = vmul.f32 0.25, %v1555_v61 }
 0xce2   : > { %v1558_v6 = vpop.xlane.xlu0 %1557 }
 0xce3   : > { %v1561_v63 = vsub.f32 %v1551_v55, %v1559_v62  ;;  %v1560_v0 = vmul.f32 0.25, %v1558_v6 }
 0xce5   : > { %v1562_v1 = vsub.f32 %v1552_v59, %v1560_v0  ;;  %v1563_v3 = vmul.f32 %v1561_v63, %v1561_v63 }
 0xce7   : > { %v1565_v5 = vsel %vm447_vm0, %v1563_v3, 0.0  ;;  %v1564_v7 = vmul.f32 %v1562_v1, %v1562_v1 }
 0xce8   : > { %1566 = vadd.xlane.f32.xlu0 %v1565_v5 }
 0xce9   : > { %v1568_v8 = vsel %vm447_vm0, %v1564_v7, 0.0 }
 0xcea   : > { %1569 = vadd.xlane.f32.xlu1 %v1568_v8 }
 0xd75   : > { %v1567_v9 = vpop.xlane.xlu0 %1566 }
 0xd76   : > { %v1571_v10 = vmul.f32 0.25, %v1567_v9 }
 0xd77   : > { %v1570_v11 = vpop.xlane.xlu1 %1569 }
 0xd78   : > { %v1573_v12 = vadd.f32 1e-05, %v1571_v10  ;;  %v1572_v13 = vmul.f32 0.25, %v1570_v11 }
 0xd7a   : > { %2161 = vrsqrt.f32 %v1573_v12  ;;  %v1574_v14 = vadd.f32 1e-05, %v1572_v13 }
 0xd7c   : > { %2163 = vrsqrt.f32 %v1574_v14 }
 0xd84   : > { %v2162_v15 = vpop.eup %2161 }
 0xd85   : > { %v1577_v16 = vmul.f32 %v2162_v15, %v1561_v63 }
 0xd86   : > { %v2164_v17 = vpop.eup %2163 }
 0xd87   : > { %vm1579_vm4 = vcmp.ge.f32.partialorder %v1577_v16, 0.0  ;;  %v1581_v18 = vmul.f32 0.2, %v1577_v16  ;;  %v1578_v19 = vmul.f32 %v2164_v17, %v1562_v1 }
 0xd89   : > { %v1583_v20 = vsel %vm1579_vm4, %v1577_v16, %v1581_v18  ;;  %v1582_v21 = vmul.f32 0.2, %v1578_v19  ;;  %vm1580_vm5 = vcmp.ge.f32.partialorder %v1578_v19, 0.0 }
 0xd8a   : > { %1597 = vrot.lane.b32.xlu1 %v1583_v20, %s2183_s17  ;;  %1591 = vrot.lane.b32.xlu0 %v1583_v20, %s2184_s18 }
 0xd8b   : > { %v1584_v22 = vsel %vm1580_vm5, %v1578_v19, %v1582_v21 }
 0xd8e   : > { %1593 = vrot.lane.b32.xlu1 %v1584_v22, %s2184_s18  ;;  %1599 = vrot.lane.b32.xlu0 %v1584_v22, %s2183_s17 }
 0xd92   : > { %1603 = vrot.lane.b32.xlu1 %v1583_v20, %s2185_s19  ;;  %1605 = vrot.lane.b32.xlu0 %v1584_v22, %s2185_s19 }
 0xdfc   : > { %v1598_v23 = vpop.permute.xlu1 %1597  ;;  %v1592_v24 = vpop.permute.xlu0 %1591 }
 0xdfd   : > { %v1609_v27 = vsel %vm887_vm13, %v1592_v24, %v1598_v23 }
 0xe00   : > { %v1594_v25 = vpop.permute.xlu1 %1593  ;;  %v1600_v26 = vpop.permute.xlu0 %1599 }
 0xe01   : > { %v1610_v28 = vsel %vm887_vm13, %v1594_v25, %v1600_v26 }
 0xe04   : > { %v1604_v29 = vpop.permute.xlu1 %1603  ;;  %v1606_v30 = vpop.permute.xlu0 %1605 }
 0xe05   : > { %v1611_v31 = vsel %vm890_vm14, %v1609_v27, %v1604_v29  ;;  %v1612_v32 = vsel %vm890_vm14, %v1610_v28, %v1606_v30 }
 0xe06   : > { %v1628_v33 = vpack.c.bf16 %v1612_v32, %v1611_v31  ;;  %1615 = vrot.lane.b32.xlu1 %v1611_v31, %s2184_s18  ;;  %1617 = vrot.lane.b32.xlu0 %v1612_v32, %s2184_s18 }
 0xe08   : > { %v1637_v34 = vunpack.c.h.bf16 %v1628_v33  ;;  %2098 = vmatpush3.bf16.msra.mxu1 %v1628_v33  ;;  %2108 = vmatpush3.bf16.msra.mxu0 %v1628_v33  ;;  %v1636_v35 = vunpack.c.l.bf16 %v1628_v33 }
 0xe09   : > { %2099 = vmatprep.subr.bf16.mxu1 %v2177_v2  ;;  %2109 = vmatprep.subr.bf16.mxu0 %v2177_v2 }
 0xe0a   : > { %v1643_v36 = vsub.f32 %v1612_v32, %v1637_v34  ;;  %1621 = vrot.lane.b32.xlu1 %v1611_v31, %s2186_s20  ;;  %1623 = vrot.lane.b32.xlu0 %v1612_v32, %s2186_s20  ;;  %v1642_v37 = vsub.f32 %v1611_v31, %v1636_v35 }
 0xe0c   : > { %v1648_v40 = vpack.c.bf16 %v1643_v36, %v1642_v37 }
 0xe0e   : > { %1784 = vperm.xlu1 %2146, %v1587_v38   ;;  %1789 = vperm.xlu0 %2145, %v1588_v39  }
 0xe78   : > { %v1616_v46 = vpop.permute.xlu1 %1615  ;;  %v1618_v47 = vpop.permute.xlu0 %1617 }
 0xe79   : > { %v1629_v48 = vpack.c.bf16 %v1618_v47, %v1616_v46 }
 0xe7b   : > { %2100 = vmatpush3.bf16.msra.mxu1 %v1629_v48  ;;  %2110 = vmatpush3.bf16.msra.mxu0 %v1629_v48  ;;  %v1638_v53 = vunpack.c.l.bf16 %v1629_v48  ;;  %v1639_v54 = vunpack.c.h.bf16 %v1629_v48 }
 0xe7c   : > { %v1622_v51 = vpop.permute.xlu1 %1621  ;;  %v1624_v52 = vpop.permute.xlu0 %1623  ;;  %2101 = vmatprep.subr.bf16.mxu1 %v2177_v2  ;;  %2111 = vmatprep.subr.bf16.mxu0 %v2177_v2 }
 0xe7d   : > { %v1630_v55 = vpack.c.bf16 %v1624_v52, %v1622_v51  ;;  %v1644_v4 = vsub.f32 %v1616_v46, %v1638_v53  ;;  %v1645_v59 = vsub.f32 %v1618_v47, %v1639_v54 }
 0xe7f   : > { %2102 = vmatpush3.bf16.msra.mxu1 %v1630_v55  ;;  %2112 = vmatpush3.bf16.msra.mxu0 %v1630_v55  ;;  %v1640_v60 = vunpack.c.l.bf16 %v1630_v55  ;;  %v1641_v61 = vunpack.c.h.bf16 %v1630_v55  ;;  %v1649_v62 = vpack.c.bf16 %v1645_v59, %v1644_v4 }
 0xe80   : > { %2117 = vmatprep.subr.bf16.mxu1 %v2177_v2 }
 0xe81   : > { %v1646_v6 = vsub.f32 %v1622_v51, %v1640_v60  ;;  %v1647_v63 = vsub.f32 %v1624_v52, %v1641_v61 }
 0xe82   : > { %2104 = vmatmul.mubr.msk.bf16.vlgmr.msra.gmra.mrb[28].mxu1 %vm931_vm15, %v1635_v57  ;;  %2114 = vmatmul.mubr.msk.bf16.vlgmr.msra.gmra.mrb[32].mxu0 %vm931_vm15, %v1627_v43 }
 0xe83   : > { %2118 = vmatpush3.bf16.msra.mxu1 %v1648_v40  ;;  %2123 = vmatprep.mubr.msk.bf16.mxu1 %vm2178_vm3, %v2177_v2  ;;  %v1650_v0 = vpack.c.bf16 %v1647_v63, %v1646_v6 }
 0xe84   : > { %2119 = vmatprep.subr.bf16.mxu1 %v2177_v2 }
 0xe87   : > { %2120 = vmatpush3.bf16.msra.mxu1 %v1649_v62 }
 0xe88   : > { %2121 = vmatprep.subr.bf16.mxu1 %v2177_v2 }
 0xe8b   : > { %2122 = vmatpush3.bf16.msra.mxu1 %v1650_v0 }
 0xe8d   : > { %v1785_v17 = vpop.permute.xlu1 %1784  ;;  %v1790_v21 = vpop.permute.xlu0 %1789 }
 0xe8e   : > { %2124 = vmatmul.mubr.msk.bf16.vlgmr.msra.gmra.mrb[32].mxu1 %vm931_vm15, %v1627_v43 }
 0xf55   : > { %v1688_v1 = vpop.f32.mrb[28].mxu1  ;;  %v1732_v3 = vpop.f32.mrb[32].mxu0 }
 0xf56   : > { %v1733_v5 = vadd.f32 %v1732_v3, %v1688_v1  ;;  %v2105_v7 = vpop.f32.mrb[29].mxu1  ;;  %v2115_v8 = vpop.f32.mrb[33].mxu0 }
 0xf57   : > { %v1691_v9 = vpop.f32.mrb[30].mxu1  ;;  %v1735_v10 = vpop.f32.mrb[34].mxu0 }
 0xf58   : > { %v1736_v11 = vadd.f32 %v1735_v10, %v1691_v9  ;;  %v2106_v12 = vpop.f32.mrb[31].mxu1  ;;  %v2116_v13 = vpop.f32.mrb[35].mxu0 }
 0xf61   : > { %v1773_v14 = vpop.f32.mrb[32].mxu1 }
 0xf62   : > { %v1780_v15 = vadd.f32 %v1773_v14, %v1733_v5  ;;  %v2125_v16 = vpop.f32.mrb[33].mxu1 }
 0xf63   : > { %v1776_v18 = vpop.f32.mrb[34].mxu1 }
 0xf64   : > { %v1781_v2 = vadd.f32 %v1776_v18, %v1736_v11  ;;  %v2126_v19 = vpop.f32.mrb[35].mxu1  ;;  %v1792_v20 = vadd.f32 %v1785_v17, %v1780_v15 }
 0xf66   : > { %v1794_v22 = vsel %vm447_vm0, %v1792_v20, 0.0  ;;  %v1793_v23 = vadd.f32 %v1790_v21, %v1781_v2 }
 0xf67   : > { %1795 = vadd.xlane.f32.xlu1 %v1794_v22 }
 0xf68   : > { %v1797_v24 = vsel %vm447_vm0, %v1793_v23, 0.0 }
 0xf69   : > { %1798 = vadd.xlane.f32.xlu0 %v1797_v24 }
 0xff4   : > { %v1796_v25 = vpop.xlane.xlu1 %1795 }
 0xff5   : > { %v1800_v26 = vmul.f32 0.25, %v1796_v25 }
 0xff6   : > { %v1799_v27 = vpop.xlane.xlu0 %1798 }
 0xff7   : > { %v1802_v28 = vsub.f32 %v1792_v20, %v1800_v26  ;;  %v1801_v29 = vmul.f32 0.25, %v1799_v27 }
 0xff9   : > { %v1803_v30 = vsub.f32 %v1793_v23, %v1801_v29  ;;  %v1804_v31 = vmul.f32 %v1802_v28, %v1802_v28 }
 0xffb   : > { %v1806_v32 = vsel %vm447_vm0, %v1804_v31, 0.0  ;;  %v1805_v33 = vmul.f32 %v1803_v30, %v1803_v30 }
 0xffc   : > { %1807 = vadd.xlane.f32.xlu0 %v1806_v32 }
 0xffd   : > { %v1809_v34 = vsel %vm447_vm0, %v1805_v33, 0.0 }
 0xffe   : > { %1810 = vadd.xlane.f32.xlu1 %v1809_v34 }
0x1089   : > { %v1808_v35 = vpop.xlane.xlu0 %1807 }
0x108a   : > { %v1812_v36 = vmul.f32 0.25, %v1808_v35 }
0x108b   : > { %v1811_v37 = vpop.xlane.xlu1 %1810 }
0x108c   : > { %v1814_v38 = vadd.f32 1e-05, %v1812_v36  ;;  %v1813_v39 = vmul.f32 0.25, %v1811_v37 }
0x108e   : > { %2165 = vrsqrt.f32 %v1814_v38  ;;  %v1815_v40 = vadd.f32 1e-05, %v1813_v39 }
0x1090   : > { %2167 = vrsqrt.f32 %v1815_v40 }
0x1098   : > { %v2166_v41 = vpop.eup %2165 }
0x1099   : > { %v1818_v42 = vmul.f32 %v2166_v41, %v1802_v28 }
0x109a   : > { %v2168_v43 = vpop.eup %2167 }
0x109b   : > { %v1820_v44 = vadd.f32 %v1818_v42, %v2446_v56  ;;  %v1819_v45 = vmul.f32 %v2168_v43, %v1803_v30 }
0x109d   : > { %1822 = vst.msk [vmem:[%s440_s21] sm:$0xff] %vm447_vm0, %v1820_v44  ;;  %v1821_v46 = vadd.f32 %v1819_v45, %v2453_v58 }
0x109f   : > { %1823 = vst.msk [vmem:[%s440_s21 + $0x8] sm:$0xff] %vm447_vm0, %v1821_v46 }
0x10a0 PF: > { %s23_s25 = sadd.s32 1, %s2175_s25  }
0x10a1   : > { %p20_p4 = scmp.ge.s32.totalorder %s23_s25, 4  }
0x10a3   :  { %22 = sbr.rel (!%p20_p4) target bundleno = 1 (0x1), region = 104 }

</bundles_post_ra>
